<compile_context>
chip_gen: v7x
topology: tpu7x:2x2x1
jax: 0.10.0
libtpu: 0.0.40
codegen_flags: <defaults>
</compile_context>

<pallas_src>
import math
import functools

import jax
import jax.numpy as jnp
from jax.experimental import pallas as pl
from jax.experimental.pallas import tpu as pltpu


def atten_block_kernel(x_ref, gamma_ref, beta_ref, wqkv_ref, bqkv_ref,
                       wo_ref, bo_ref, o_ref, *, num_heads, eps):
    # One grid step == `block_b` whole batch elements.
    bb, S, H = x_ref.shape
    d_k = H // num_heads
    M = bb * S                                            # rows per projection

    # Collapse leading dims (layout-preserving: S is a multiple of 8 sublanes)
    # so the projection matmuls see M = bb*S rows on the MXU.
    x = x_ref[...].reshape(M, H).astype(jnp.float32)      # (M, H)

    # ---- LayerNorm (BERT-pytorch custom: unbiased std, eps added to std) ----
    mean = jnp.mean(x, axis=-1, keepdims=True)
    xc = x - mean
    var_unb = jnp.sum(xc * xc, axis=-1, keepdims=True) * (1.0 / (H - 1))
    std = jnp.sqrt(var_unb)
    ln = gamma_ref[0] * (xc / (std + eps)) + beta_ref[0]  # exact f32 path

    # ---- fused Q/K/V projection: (M,H) @ (H,3H) bf16 matmul, f32 acc ----
    qkv = jnp.dot(ln.astype(jnp.bfloat16), wqkv_ref[...],
                  preferred_element_type=jnp.float32) + bqkv_ref[0]
    scale = 1.0 / math.sqrt(d_k)
    q = (qkv[:, :H] * scale).astype(jnp.bfloat16)         # (M, H)
    k = qkv[:, H:2 * H].astype(jnp.bfloat16)
    v = qkv[:, 2 * H:].astype(jnp.bfloat16)

    # ---- attention: all heads batched per batch element ----
    ctx_rows = []
    for b in range(bb):                                   # static, short loop
        qb = q[b * S:(b + 1) * S]                         # (S, H) static row slice
        kb = k[b * S:(b + 1) * S]
        vb = v[b * S:(b + 1) * S]
        qh = jnp.swapaxes(qb.reshape(S, num_heads, d_k), 0, 1)   # (h, S, dk)
        kh = jnp.swapaxes(kb.reshape(S, num_heads, d_k), 0, 1)
        vh = jnp.swapaxes(vb.reshape(S, num_heads, d_k), 0, 1)

        s = jnp.einsum('hqd,hkd->hqk', qh, kh,
                       preferred_element_type=jnp.float32)       # (h, q, k)
        s = s - jnp.max(s, axis=-1, keepdims=True)
        e = jnp.exp(s)
        # approx reciprocal (EUP slot) kept only for the softmax denominator.
        p = e * pl.reciprocal(jnp.sum(e, axis=-1, keepdims=True), approx=True)

        cb = jnp.einsum('hqk,hkd->hqd', p.astype(jnp.bfloat16), vh,
                        preferred_element_type=jnp.float32)      # (h, q, dk)
        ctx_rows.append(jnp.swapaxes(cb, 0, 1).reshape(S, H))    # (S, H)

    attn = ctx_rows[0] if bb == 1 else jnp.concatenate(ctx_rows, axis=0)  # (M, H)

    # ---- output projection + residual ----
    out = jnp.dot(attn.astype(jnp.bfloat16), wo_ref[...],
                  preferred_element_type=jnp.float32) + bo_ref[0]
    o_ref[...] = (x + out).reshape(bb, S, H).astype(o_ref.dtype)


def _vmem_limit_bytes():
    # Generation-aware scoped-VMEM limit: ~3/4 of physical VMEM
    # (~96 MiB v5e/v6e, ~48 MiB v7x); safe fallback if the query fails.
    try:
        cap = pltpu.get_tpu_info().vmem_capacity_bytes
        if cap:
            return int(cap * 3 // 4)
    except Exception:
        pass
    return 48 * 1024 * 1024


def prepare_atten_params(params):
    """One-time parameter prep: fuse Wq/Wk/Wv and pre-cast matmul weights to bf16."""
    gamma, beta, wq, bq, wk, bk, wv, bv, wo, bo = params
    wqkv = jnp.concatenate([wq, wk, wv], axis=1).astype(jnp.bfloat16)   # (H, 3H)
    bqkv = jnp.concatenate([bq, bk, bv], axis=1).astype(jnp.float32)    # (1, 3H)
    return (gamma.astype(jnp.float32), beta.astype(jnp.float32),
            wqkv, bqkv, wo.astype(jnp.bfloat16), bo.astype(jnp.float32))


def atten_block(x, prepared_params, *, num_heads, eps=1e-6, block_b=None):
    B, S, H = x.shape
    gamma, beta, wqkv, bqkv, wo_b, bo = prepared_params
    assert H % num_heads == 0, "hidden size must be divisible by num_heads"

    # Choose how many whole batches to process per grid step: target ~256 rows
    # for the projection matmuls (fills MXU M), capped by a crude VMEM budget.
    if block_b is None:
        target_rows = 256
        vmem_rows = max(1, (8 * 1024 * 1024) // max(1, 12 * H))  # f32 qkv bytes/row
        rows_cap = max(1, min(target_rows, vmem_rows) // max(1, S))
        block_b = max(1, min(B, rows_cap))
        while block_b > 1 and B % block_b:
            block_b -= 1
    assert block_b >= 1 and B % block_b == 0, "B must be divisible by block_b"
    grid = (B // block_b,)

    kernel = functools.partial(atten_block_kernel, num_heads=num_heads, eps=eps)

    vec_spec = lambda n: pl.BlockSpec((1, n), lambda i: (0, 0))
    flops = 8 * B * S * H * H + 4 * B * S * S * H
    transcendentals = B * num_heads * S * S + B * num_heads * S
    bytes_accessed = (2 * B * S * H * 4            # x in + out (f32)
                      + 4 * H * H * 2              # wqkv + wo (bf16)
                      + (3 * H + H + 2 * H) * 4)   # biases + gamma/beta (f32)

    return pl.pallas_call(
        kernel,
        out_shape=jax.ShapeDtypeStruct((B, S, H), x.dtype),
        grid_spec=pltpu.PrefetchScalarGridSpec(
            num_scalar_prefetch=0,
            grid=grid,
            in_specs=[
                pl.BlockSpec((block_b, S, H), lambda i: (i, 0, 0)),   # x
                vec_spec(H),                                          # gamma
                vec_spec(H),                                          # beta
                pl.BlockSpec((H, 3 * H), lambda i: (0, 0)),           # fused Wqkv
                vec_spec(3 * H),                                      # fused bqkv
                pl.BlockSpec((H, H), lambda i: (0, 0)),               # Wo
                vec_spec(H),                                          # bo
            ],
            out_specs=pl.BlockSpec((block_b, S, H), lambda i: (i, 0, 0)),
        ),
        compiler_params=pltpu.CompilerParams(
            dimension_semantics=("parallel",),
            vmem_limit_bytes=_vmem_limit_bytes(),
        ),
        cost_estimate=pl.CostEstimate(
            flops=flops,
            transcendentals=transcendentals,
            bytes_accessed=bytes_accessed,
        ),
    )(x, gamma, beta, wqkv, bqkv, wo_b, bo)


def atten_block_reference(x, params, *, num_heads, eps=1e-6):
    """Pure-JAX f32 reference mirroring the PyTorch module (eval mode)."""
    gamma, beta, wq, bq, wk, bk, wv, bv, wo, bo = params
    B, S, H = x.shape
    d_k = H // num_heads

    mean = jnp.mean(x, axis=-1, keepdims=True)
    xc = x - mean
    std = jnp.sqrt(jnp.sum(xc * xc, axis=-1, keepdims=True) / (H - 1))
    ln = gamma[0] * xc / (std + eps) + beta[0]

    q = ln @ wq + bq[0]
    k = ln @ wk + bk[0]
    v = ln @ wv + bv[0]

    def split(t):  # (B,S,H) -> (B,nh,S,dk)
        return t.reshape(B, S, num_heads, d_k).transpose(0, 2, 1, 3)

    qh, kh, vh = split(q), split(k), split(v)
    scores = jnp.einsum("bhqd,bhkd->bhqk", qh, kh) / math.sqrt(d_k)
    p = jax.nn.softmax(scores, axis=-1)
    ctx = jnp.einsum("bhqk,bhkd->bhqd", p, vh)
    ctx = ctx.transpose(0, 2, 1, 3).reshape(B, S, H)
    return x + (ctx @ wo + bo[0])


if __name__ == "__main__":
    B, S, H, num_heads = 4, 8, 32, 4

    key = jax.random.PRNGKey(0)
    k_x, k_wq, k_wk, k_wv, k_wo, k_bq, k_bk, k_bv, k_bo = jax.random.split(key, 9)

    x = jax.random.normal(k_x, (B, S, H), dtype=jnp.float32)

    def lin_w(k):
        return jax.random.normal(k, (H, H), dtype=jnp.float32) * (1.0 / math.sqrt(H))

    def lin_b(k):
        return jax.random.normal(k, (1, H), dtype=jnp.float32) * 0.01

    params = (
        jnp.ones((1, H), dtype=jnp.float32),   # layernorm gamma (a_2)
        jnp.zeros((1, H), dtype=jnp.float32),  # layernorm beta  (b_2)
        lin_w(k_wq), lin_b(k_bq),
        lin_w(k_wk), lin_b(k_bk),
        lin_w(k_wv), lin_b(k_bv),
        lin_w(k_wo), lin_b(k_bo),
    )

    prepared = prepare_atten_params(params)

    # block_b=2 -> grid=(2,), two whole batches per grid step (exercises both
    # the multi-batch row block and the multi-step grid path).
    out = atten_block(x, prepared, num_heads=num_heads, block_b=2)
    out = jax.block_until_ready(out)

    ref = atten_block_reference(x, params, num_heads=num_heads)
    assert out.shape == (B, S, H)
    # Tolerance reflects bf16 MXU operands (f32 accumulation) and the approx
    # softmax reciprocal; LN now uses the exact path, so tighter than before.
    assert jnp.allclose(out, ref, atol=5e-2, rtol=5e-2), "mismatch vs reference"

    print("KERNEL_OK")
</pallas_src>

<mosaic_0001>
module attributes {stable_mosaic.version = 11 : i64} {
  func.func @atten_block_kernel(%arg0: i32, %arg1: memref<2x8x32xf32, #tpu.memory_space<vmem>>, %arg2: memref<1x32xf32, #tpu.memory_space<vmem>>, %arg3: memref<1x32xf32, #tpu.memory_space<vmem>>, %arg4: memref<32x96xbf16, #tpu.memory_space<vmem>>, %arg5: memref<1x96xf32, #tpu.memory_space<vmem>>, %arg6: memref<32x32xbf16, #tpu.memory_space<vmem>>, %arg7: memref<1x32xf32, #tpu.memory_space<vmem>>, %arg8: memref<2x8x32xf32, #tpu.memory_space<vmem>>) attributes {dimension_semantics = [#tpu.dimension_semantics<parallel>], iteration_bounds = array<i64: 2>, scalar_prefetch = 0 : i64, scratch_operands = 0 : i64, tpu.core_type = #tpu.core_type<tc>, window_params = [{transform_indices = @transform_0, window_bounds = array<i64: 2, 8, 32>}, {pipeline_mode = #tpu.pipeline_mode<synchronous>, transform_indices = @transform_1, window_bounds = array<i64: 1, 32>}, {pipeline_mode = #tpu.pipeline_mode<synchronous>, transform_indices = @transform_2, window_bounds = array<i64: 1, 32>}, {pipeline_mode = #tpu.pipeline_mode<synchronous>, transform_indices = @transform_3, window_bounds = array<i64: 32, 96>}, {pipeline_mode = #tpu.pipeline_mode<synchronous>, transform_indices = @transform_4, window_bounds = array<i64: 1, 96>}, {pipeline_mode = #tpu.pipeline_mode<synchronous>, transform_indices = @transform_5, window_bounds = array<i64: 32, 32>}, {pipeline_mode = #tpu.pipeline_mode<synchronous>, transform_indices = @transform_6, window_bounds = array<i64: 1, 32>}, {transform_indices = @transform_7, window_bounds = array<i64: 2, 8, 32>}]} {
    %c0 = arith.constant 0 : index
    %c0_0 = arith.constant 0 : index
    %c0_1 = arith.constant 0 : index
    %0 = vector.load %arg1[%c0, %c0_0, %c0_1] : memref<2x8x32xf32, #tpu.memory_space<vmem>>, vector<2x8x32xf32>
    %1 = vector.shape_cast %0 : vector<2x8x32xf32> to vector<16x32xf32>
    %cst = arith.constant dense<0.000000e+00> : vector<16xf32>
    %2 = vector.multi_reduction <add>, %1, %cst [1] : vector<16x32xf32> to vector<16xf32>
    %3 = vector.shape_cast %2 : vector<16xf32> to vector<16x1xf32>
    %cst_2 = arith.constant 3.200000e+01 : f32
    %4 = vector.broadcast %cst_2 : f32 to vector<16x1xf32>
    %5 = arith.divf %3, %4 : vector<16x1xf32>
    %6 = vector.broadcast %5 : vector<16x1xf32> to vector<16x32xf32>
    %7 = arith.subf %1, %6 : vector<16x32xf32>
    %8 = arith.mulf %7, %7 : vector<16x32xf32>
    %cst_3 = arith.constant dense<0.000000e+00> : vector<16xf32>
    %9 = vector.multi_reduction <add>, %8, %cst_3 [1] : vector<16x32xf32> to vector<16xf32>
    %10 = vector.shape_cast %9 : vector<16xf32> to vector<16x1xf32>
    %cst_4 = arith.constant 0.0322580636 : f32
    %11 = vector.broadcast %cst_4 : f32 to vector<16x1xf32>
    %12 = arith.mulf %10, %11 : vector<16x1xf32>
    %13 = math.sqrt %12 : vector<16x1xf32>
    %c0_5 = arith.constant 0 : index
    %c0_6 = arith.constant 0 : index
    %14 = vector.load %arg2[%c0_5, %c0_6] : memref<1x32xf32, #tpu.memory_space<vmem>>, vector<1x32xf32>
    %15 = vector.shape_cast %14 : vector<1x32xf32> to vector<32xf32>
    %cst_7 = arith.constant 9.99999997E-7 : f32
    %16 = vector.broadcast %cst_7 : f32 to vector<16x1xf32>
    %17 = arith.addf %13, %16 : vector<16x1xf32>
    %18 = vector.broadcast %17 : vector<16x1xf32> to vector<16x32xf32>
    %19 = arith.divf %7, %18 : vector<16x32xf32>
    %20 = vector.shape_cast %15 : vector<32xf32> to vector<1x32xf32>
    %21 = vector.broadcast %20 : vector<1x32xf32> to vector<16x32xf32>
    %22 = arith.mulf %21, %19 : vector<16x32xf32>
    %c0_8 = arith.constant 0 : index
    %c0_9 = arith.constant 0 : index
    %23 = vector.load %arg3[%c0_8, %c0_9] : memref<1x32xf32, #tpu.memory_space<vmem>>, vector<1x32xf32>
    %24 = vector.shape_cast %23 : vector<1x32xf32> to vector<32xf32>
    %25 = vector.shape_cast %24 : vector<32xf32> to vector<1x32xf32>
    %26 = vector.broadcast %25 : vector<1x32xf32> to vector<16x32xf32>
    %27 = arith.addf %22, %26 : vector<16x32xf32>
    %28 = arith.truncf %27 : vector<16x32xf32> to vector<16x32xbf16>
    %c0_10 = arith.constant 0 : index
    %c0_11 = arith.constant 0 : index
    %29 = vector.load %arg4[%c0_10, %c0_11] : memref<32x96xbf16, #tpu.memory_space<vmem>>, vector<32x96xbf16>
    %cst_12 = arith.constant dense<0.000000e+00> : vector<16x96xf32>
    %30 = tpu.matmul %28, %29, %cst_12 {dimension_numbers = #tpu.dot_dimension_numbers<[1], [0], [0], [1], [0, 0, 1, 1], [], []>} : vector<16x32xbf16>, vector<32x96xbf16>, vector<16x96xf32> -> vector<16x96xf32>
    %c0_13 = arith.constant 0 : index
    %c0_14 = arith.constant 0 : index
    %31 = vector.load %arg5[%c0_13, %c0_14] : memref<1x96xf32, #tpu.memory_space<vmem>>, vector<1x96xf32>
    %32 = vector.shape_cast %31 : vector<1x96xf32> to vector<96xf32>
    %33 = vector.shape_cast %32 : vector<96xf32> to vector<1x96xf32>
    %34 = vector.broadcast %33 : vector<1x96xf32> to vector<16x96xf32>
    %35 = arith.addf %30, %34 : vector<16x96xf32>
    %36 = vector.extract_strided_slice %35 {offsets = [0, 0], sizes = [16, 32], strides = [1, 1]} : vector<16x96xf32> to vector<16x32xf32>
    %cst_15 = arith.constant 0.353553385 : f32
    %37 = vector.broadcast %cst_15 : f32 to vector<16x32xf32>
    %38 = arith.mulf %36, %37 : vector<16x32xf32>
    %39 = arith.truncf %38 : vector<16x32xf32> to vector<16x32xbf16>
    %40 = vector.extract_strided_slice %35 {offsets = [0, 32], sizes = [16, 32], strides = [1, 1]} : vector<16x96xf32> to vector<16x32xf32>
    %41 = arith.truncf %40 : vector<16x32xf32> to vector<16x32xbf16>
    %42 = vector.extract_strided_slice %35 {offsets = [0, 64], sizes = [16, 32], strides = [1, 1]} : vector<16x96xf32> to vector<16x32xf32>
    %43 = arith.truncf %42 : vector<16x32xf32> to vector<16x32xbf16>
    %44 = vector.extract_strided_slice %39 {offsets = [0, 0], sizes = [8, 32], strides = [1, 1]} : vector<16x32xbf16> to vector<8x32xbf16>
    %45 = vector.extract_strided_slice %41 {offsets = [0, 0], sizes = [8, 32], strides = [1, 1]} : vector<16x32xbf16> to vector<8x32xbf16>
    %46 = vector.extract_strided_slice %43 {offsets = [0, 0], sizes = [8, 32], strides = [1, 1]} : vector<16x32xbf16> to vector<8x32xbf16>
    %47 = vector.shape_cast %44 : vector<8x32xbf16> to vector<8x4x8xbf16>
    %48 = tpu.transpose %47, [1, 0, 2] : vector<8x4x8xbf16> -> vector<4x8x8xbf16>
    %49 = vector.shape_cast %45 : vector<8x32xbf16> to vector<8x4x8xbf16>
    %50 = tpu.transpose %49, [1, 0, 2] : vector<8x4x8xbf16> -> vector<4x8x8xbf16>
    %51 = vector.shape_cast %46 : vector<8x32xbf16> to vector<8x4x8xbf16>
    %52 = tpu.transpose %51, [1, 0, 2] : vector<8x4x8xbf16> -> vector<4x8x8xbf16>
    "tpu.trace_start"() <{level = 10 : i32, message = "hqd,hkd->hqk"}> : () -> ()
    %cst_16 = arith.constant dense<0.000000e+00> : vector<4x8x8xf32>
    %53 = tpu.matmul %48, %50, %cst_16 {dimension_numbers = #tpu.dot_dimension_numbers<[2], [2], [1], [1], [0, 0, 0, 1, 1, 1], [0], [0]>} : vector<4x8x8xbf16>, vector<4x8x8xbf16>, vector<4x8x8xf32> -> vector<4x8x8xf32>
    "tpu.trace_stop"() : () -> ()
    %cst_17 = arith.constant dense<0xFF800000> : vector<4x8xf32>
    %54 = vector.multi_reduction <maximumf>, %53, %cst_17 [2] : vector<4x8x8xf32> to vector<4x8xf32>
    %55 = vector.shape_cast %54 : vector<4x8xf32> to vector<4x8x1xf32>
    %56 = vector.broadcast %55 : vector<4x8x1xf32> to vector<4x8x8xf32>
    %57 = arith.subf %53, %56 : vector<4x8x8xf32>
    %58 = math.exp %57 : vector<4x8x8xf32>
    %cst_18 = arith.constant dense<0.000000e+00> : vector<4x8xf32>
    %59 = vector.multi_reduction <add>, %58, %cst_18 [2] : vector<4x8x8xf32> to vector<4x8xf32>
    %60 = vector.shape_cast %59 : vector<4x8xf32> to vector<4x8x1xf32>
    %61 = tpu.reciprocal %60 {approx = true} : vector<4x8x1xf32> -> vector<4x8x1xf32>
    %62 = vector.broadcast %61 : vector<4x8x1xf32> to vector<4x8x8xf32>
    %63 = arith.mulf %58, %62 : vector<4x8x8xf32>
    %64 = arith.truncf %63 : vector<4x8x8xf32> to vector<4x8x8xbf16>
    "tpu.trace_start"() <{level = 10 : i32, message = "hqk,hkd->hqd"}> : () -> ()
    %cst_19 = arith.constant dense<0.000000e+00> : vector<4x8x8xf32>
    %65 = tpu.matmul %64, %52, %cst_19 {dimension_numbers = #tpu.dot_dimension_numbers<[2], [1], [1], [2], [0, 0, 0, 1, 1, 2], [0], [0]>} : vector<4x8x8xbf16>, vector<4x8x8xbf16>, vector<4x8x8xf32> -> vector<4x8x8xf32>
    "tpu.trace_stop"() : () -> ()
    %66 = tpu.transpose %65, [1, 0, 2] : vector<4x8x8xf32> -> vector<8x4x8xf32>
    %67 = vector.shape_cast %66 : vector<8x4x8xf32> to vector<8x32xf32>
    %68 = vector.extract_strided_slice %39 {offsets = [8, 0], sizes = [8, 32], strides = [1, 1]} : vector<16x32xbf16> to vector<8x32xbf16>
    %69 = vector.extract_strided_slice %41 {offsets = [8, 0], sizes = [8, 32], strides = [1, 1]} : vector<16x32xbf16> to vector<8x32xbf16>
    %70 = vector.extract_strided_slice %43 {offsets = [8, 0], sizes = [8, 32], strides = [1, 1]} : vector<16x32xbf16> to vector<8x32xbf16>
    %71 = vector.shape_cast %68 : vector<8x32xbf16> to vector<8x4x8xbf16>
    %72 = tpu.transpose %71, [1, 0, 2] : vector<8x4x8xbf16> -> vector<4x8x8xbf16>
    %73 = vector.shape_cast %69 : vector<8x32xbf16> to vector<8x4x8xbf16>
    %74 = tpu.transpose %73, [1, 0, 2] : vector<8x4x8xbf16> -> vector<4x8x8xbf16>
    %75 = vector.shape_cast %70 : vector<8x32xbf16> to vector<8x4x8xbf16>
    %76 = tpu.transpose %75, [1, 0, 2] : vector<8x4x8xbf16> -> vector<4x8x8xbf16>
    "tpu.trace_start"() <{level = 10 : i32, message = "hqd,hkd->hqk"}> : () -> ()
    %cst_20 = arith.constant dense<0.000000e+00> : vector<4x8x8xf32>
    %77 = tpu.matmul %72, %74, %cst_20 {dimension_numbers = #tpu.dot_dimension_numbers<[2], [2], [1], [1], [0, 0, 0, 1, 1, 1], [0], [0]>} : vector<4x8x8xbf16>, vector<4x8x8xbf16>, vector<4x8x8xf32> -> vector<4x8x8xf32>
    "tpu.trace_stop"() : () -> ()
    %cst_21 = arith.constant dense<0xFF800000> : vector<4x8xf32>
    %78 = vector.multi_reduction <maximumf>, %77, %cst_21 [2] : vector<4x8x8xf32> to vector<4x8xf32>
    %79 = vector.shape_cast %78 : vector<4x8xf32> to vector<4x8x1xf32>
    %80 = vector.broadcast %79 : vector<4x8x1xf32> to vector<4x8x8xf32>
    %81 = arith.subf %77, %80 : vector<4x8x8xf32>
    %82 = math.exp %81 : vector<4x8x8xf32>
    %cst_22 = arith.constant dense<0.000000e+00> : vector<4x8xf32>
    %83 = vector.multi_reduction <add>, %82, %cst_22 [2] : vector<4x8x8xf32> to vector<4x8xf32>
    %84 = vector.shape_cast %83 : vector<4x8xf32> to vector<4x8x1xf32>
    %85 = tpu.reciprocal %84 {approx = true} : vector<4x8x1xf32> -> vector<4x8x1xf32>
    %86 = vector.broadcast %85 : vector<4x8x1xf32> to vector<4x8x8xf32>
    %87 = arith.mulf %82, %86 : vector<4x8x8xf32>
    %88 = arith.truncf %87 : vector<4x8x8xf32> to vector<4x8x8xbf16>
    "tpu.trace_start"() <{level = 10 : i32, message = "hqk,hkd->hqd"}> : () -> ()
    %cst_23 = arith.constant dense<0.000000e+00> : vector<4x8x8xf32>
    %89 = tpu.matmul %88, %76, %cst_23 {dimension_numbers = #tpu.dot_dimension_numbers<[2], [1], [1], [2], [0, 0, 0, 1, 1, 2], [0], [0]>} : vector<4x8x8xbf16>, vector<4x8x8xbf16>, vector<4x8x8xf32> -> vector<4x8x8xf32>
    "tpu.trace_stop"() : () -> ()
    %90 = tpu.transpose %89, [1, 0, 2] : vector<4x8x8xf32> -> vector<8x4x8xf32>
    %91 = vector.shape_cast %90 : vector<8x4x8xf32> to vector<8x32xf32>
    %92 = tpu.concatenate %67, %91 in 0 : vector<8x32xf32>, vector<8x32xf32> -> vector<16x32xf32>
    %93 = arith.truncf %92 : vector<16x32xf32> to vector<16x32xbf16>
    %c0_24 = arith.constant 0 : index
    %c0_25 = arith.constant 0 : index
    %94 = vector.load %arg6[%c0_24, %c0_25] : memref<32x32xbf16, #tpu.memory_space<vmem>>, vector<32x32xbf16>
    %cst_26 = arith.constant dense<0.000000e+00> : vector<16x32xf32>
    %95 = tpu.matmul %93, %94, %cst_26 {dimension_numbers = #tpu.dot_dimension_numbers<[1], [0], [0], [1], [0, 0, 1, 1], [], []>} : vector<16x32xbf16>, vector<32x32xbf16>, vector<16x32xf32> -> vector<16x32xf32>
    %c0_27 = arith.constant 0 : index
    %c0_28 = arith.constant 0 : index
    %96 = vector.load %arg7[%c0_27, %c0_28] : memref<1x32xf32, #tpu.memory_space<vmem>>, vector<1x32xf32>
    %97 = vector.shape_cast %96 : vector<1x32xf32> to vector<32xf32>
    %98 = vector.shape_cast %97 : vector<32xf32> to vector<1x32xf32>
    %99 = vector.broadcast %98 : vector<1x32xf32> to vector<16x32xf32>
    %100 = arith.addf %95, %99 : vector<16x32xf32>
    %101 = arith.addf %1, %100 : vector<16x32xf32>
    %102 = vector.shape_cast %101 : vector<16x32xf32> to vector<2x8x32xf32>
    %c0_29 = arith.constant 0 : index
    %c0_30 = arith.constant 0 : index
    %c0_31 = arith.constant 0 : index
    %103 = vector.load %arg8[%c0_29, %c0_30, %c0_31] : memref<2x8x32xf32, #tpu.memory_space<vmem>>, vector<2x8x32xf32>
    tpu.vector_store %arg8[%c0_29, %c0_30, %c0_31], %102 {strides = array<i32>} : memref<2x8x32xf32, #tpu.memory_space<vmem>>, vector<2x8x32xf32>,
    return
  }
  func.func @transform_0(%arg0: i32) -> (i32, i32, i32) {
    %c0_i32 = arith.constant 0 : i32
    %c0_i32_0 = arith.constant 0 : i32
    %c0_i32_1 = arith.constant 0 : i32
    return %arg0, %c0_i32, %c0_i32_0 : i32, i32, i32
  }
  func.func @transform_1(%arg0: i32) -> (i32, i32) {
    %c0_i32 = arith.constant 0 : i32
    %c0_i32_0 = arith.constant 0 : i32
    %c0_i32_1 = arith.constant 0 : i32
    return %c0_i32, %c0_i32_0 : i32, i32
  }
  func.func @transform_2(%arg0: i32) -> (i32, i32) {
    %c0_i32 = arith.constant 0 : i32
    %c0_i32_0 = arith.constant 0 : i32
    %c0_i32_1 = arith.constant 0 : i32
    return %c0_i32, %c0_i32_0 : i32, i32
  }
  func.func @transform_3(%arg0: i32) -> (i32, i32) {
    %c0_i32 = arith.constant 0 : i32
    %c0_i32_0 = arith.constant 0 : i32
    %c0_i32_1 = arith.constant 0 : i32
    return %c0_i32, %c0_i32_0 : i32, i32
  }
  func.func @transform_4(%arg0: i32) -> (i32, i32) {
    %c0_i32 = arith.constant 0 : i32
    %c0_i32_0 = arith.constant 0 : i32
    %c0_i32_1 = arith.constant 0 : i32
    return %c0_i32, %c0_i32_0 : i32, i32
  }
  func.func @transform_5(%arg0: i32) -> (i32, i32) {
    %c0_i32 = arith.constant 0 : i32
    %c0_i32_0 = arith.constant 0 : i32
    %c0_i32_1 = arith.constant 0 : i32
    return %c0_i32, %c0_i32_0 : i32, i32
  }
  func.func @transform_6(%arg0: i32) -> (i32, i32) {
    %c0_i32 = arith.constant 0 : i32
    %c0_i32_0 = arith.constant 0 : i32
    %c0_i32_1 = arith.constant 0 : i32
    return %c0_i32, %c0_i32_0 : i32, i32
  }
  func.func @transform_7(%arg0: i32) -> (i32, i32, i32) {
    %c0_i32 = arith.constant 0 : i32
    %c0_i32_0 = arith.constant 0 : i32
    %c0_i32_1 = arith.constant 0 : i32
    return %arg0, %c0_i32, %c0_i32_0 : i32, i32, i32
  }
}

</mosaic_0001>

<bundles_post_ra>
// kernel: tpu_custom_call.1
= control target key start
LH: loop header
LB: loop body
LE: loop exit
PB: predicated region body
PF: predicated region fallthrough
CT: control target
= control target key end

     0   :  { %12 = vsyncpa [#allocation3], 0  ;;  %s4077_s0 = inlined_call_operand.hbm [shape: f32[4,8,32], index: 0, kind: input, shape index: {}]   ;;  %s4078_s1 = inlined_call_operand.vmem [shape: f32[1,32], index: 1, kind: input, shape index: {}]   ;;  %s4079_s2 = inlined_call_operand.vmem [shape: f32[1,32], index: 2, kind: input, shape index: {}]   ;;  %s4080_s3 = inlined_call_operand.hbm [shape: bf16[32,96], index: 3, kind: input, shape index: {}]   ;;  %s4081_s4 = inlined_call_operand.hbm [shape: f32[1,96], index: 4, kind: input, shape index: {}]   ;;  %s4082_s5 = inlined_call_operand.vmem [shape: bf16[32,32], index: 5, kind: input, shape index: {}]   ;;  %s4083_s6 = inlined_call_operand.vmem [shape: f32[1,32], index: 6, kind: input, shape index: {}]   ;;  %s4084_s7 = inlined_call_operand.hbm [shape: f32[4,8,32], index: 7, kind: output, shape index: {}]  }
   0x1   :  { %14 = vsyncpa [#allocation3 + $0x1], 0 }
   0x2   :  { %15 = vsyncpa [#allocation6], 0 }
   0x3   :  { %16 = vsyncpa [#allocation4], 0 }
   0x4   :  { %18 = vsyncpa [#allocation4 + $0x1], 0  ;;  %s3368_s24 = smov 0   ;;  %s3370_s25 = smov 0  }
   0x5   :  { %s3372_s26 = smov 0   ;;  %s3374_s27 = smov 0  }
   0x6 LB: > { %s3389_s28 = sadd.s32 4294967295, %s3304_s27   ;;  %s2802_s29 = sadd.s32 4294967294, %s3304_s27   ;;  %s3304_s27 = sphi %s3374_s27, %s4104_s27   ;;  %s3300_s26 = sphi %s3372_s26, %s4103_s26   ;;  %s3296_s25 = sphi %s3370_s25, %s4102_s25   ;;  %s3292_s24 = sphi %s3368_s24, %s4101_s24  }
   0x7   : > { %p44_p0 = scmp.ne.s32.totalorder %s3296_s25, %s3292_s24  ;;  %p4085_p1 = scmp.eq.s32.totalorder %s3389_s28, 0 }
   0x8   : > { %p200_p3 = scmp.eq.s32.totalorder %s2802_s29, 1  ;;  %p2803_p5 = scmp.ge.s32.totalorder %s3304_s27, 1 }
   0x9   : > { %p3398_p4 = por %p4085_p1, %p44_p0  ;;  %p207_p7 = scmp.lt.s32.totalorder %s3304_s27, 3 }
   0xa   : > { %p3403_p6 = por %p200_p3, %p44_p0  ;;  %s3306_s10 = smov [#allocation5]  }
   0xb   : > { %s4088_s30 = scalar_select %p3398_p4, 1, 0 }
   0xc   : > { %s4089_s8 = scalar_select %p3403_p6, 1, 0 }
   0xd   : > { %p3408_p8 = pnand %p2803_p5, %p207_p7  ;;  %s225_s11 = sshll.u32 %s3306_s10, 4  ;;  %s3412_s11 = int_to_ptr.vmem [resolvable:$true] %s225_s11 }
   0xe   : > { %s3307_s13 = smov [#allocation7]   ;;  %s3148_s17 = scalar_lea.hbm %s4080_s3, 256 }
   0xf   : > { %p3014_p9 = pneg %p3408_p8  ;;  %s239_s14 = sshll.u32 %s3307_s13, 4  ;;  %s3423_s14 = int_to_ptr.vmem [resolvable:$true] %s239_s14 }
  0x10   : > { %p3149_p12 = scmp.ne.s32.totalorder %s4080_s3, %s3148_s17  ;;  %p3155_p5 = scmp.lt.u32.totalorder %s3148_s17, %s4080_s3 }
  0x11   : > { %p3419_p11 = pnand %p3014_p9, %p4085_p1 }
  0x13   : > { %p3150_p13 = pneg %p3419_p11 }
  0x15   : > { %p3151_p0 = pnand %p3150_p13, %p3149_p12 }
  0x17   : > { %p3152_p3 = pneg %p3151_p0 }
  0x19   : > { %p3157_p7 = pnand %p3155_p5, %p3152_p3 }
  0x1b   : > { %3160 = shalt.err (!%p3157_p7)
}
  0x1c   : > { %s3161_s22 = scalar_lea.vmem %s3412_s11, 256  ;;  %p3169_p2 = scmp.lt.s32.totalorder %s3412_s11, %s3412_s11 }
  0x1d   : > { %p3162_p9 = scmp.ne.s32.totalorder %s3412_s11, %s3161_s22  ;;  %p3170_p12 = scmp.lt.s32.totalorder %s3161_s22, %s3161_s22 }
  0x1f   : > { %p3164_p10 = pnand %p3162_p9, %p3150_p13  ;;  %p3171_p0 = por %p3170_p12, %p3169_p2 }
  0x21   : > { %p3165_p1 = pneg %p3164_p10 }
  0x23   : > { %p3172_p6 = pnand %p3171_p0, %p3165_p1 }
  0x25   : > { %3175 = shalt.err (!%p3172_p6)
}
  0x26   : > { %s3308_s23 = smov 64   ;;  %s3309_s29 = smov 4  }
  0x27   : > { %3017 = dma.hbm_to_vmem [thread:$0]  (!%p3419_p11), %s4080_s3, 256, %s3412_s11, [#allocation6], %s3308_s23, %s3308_s23, %s3309_s29  }
  0x28   : > { %s3176_s17 = scalar_lea.hbm %s4081_s4, 16 }
  0x29   : > { %p3177_p2 = scmp.ne.s32.totalorder %s4081_s4, %s3176_s17  ;;  %p3183_p10 = scmp.lt.u32.totalorder %s3176_s17, %s4081_s4 }
  0x2b   : > { %p3179_p1 = pnand %p3177_p2, %p3150_p13 }
  0x2d   : > { %p3180_p6 = pneg %p3179_p1 }
  0x2f   : > { %p3185_p3 = pnand %p3183_p10, %p3180_p6 }
  0x31   : > { %3188 = shalt.err (!%p3185_p3)
}
  0x32   : > { %s3189_s11 = scalar_lea.vmem %s3423_s14, 16  ;;  %s3196_s22 = scalar_lea.vmem %s3423_s14, 32 }
  0x33   : > { %p3190_p5 = scmp.ne.s32.totalorder %s3423_s14, %s3189_s11  ;;  %p3197_p12 = scmp.lt.s32.totalorder %s3423_s14, %s3423_s14 }
  0x34   : > { %p3198_p0 = scmp.lt.s32.totalorder %s3196_s22, %s3189_s11 }
  0x35   : > { %p3192_p7 = pnand %p3190_p5, %p3150_p13 }
  0x36   : > { %p3199_p2 = por %p3198_p0, %p3197_p12 }
  0x37   : > { %p3193_p9 = pneg %p3192_p7 }
  0x39   : > { %p3200_p1 = pnand %p3199_p2, %p3193_p9 }
  0x3b   : > { %3203 = shalt.err (!%p3200_p1)
}
  0x3c   : > { %3020 = dma.hbm_to_vmem [thread:$0]  (!%p3419_p11), %s4081_s4, 16, %s3423_s14, [#allocation6]  }
  0x3d   : > { %s3479_s10 = sadd.s32 1, %s3304_s27   ;;  %s31_s12 = sadd.s32 1, %s3300_s26 }
  0x3e   : > { %s28_s13 = ssub.s32 %s3304_s27, %s3479_s10  ;;  %p38_p13 = scmp.ne.s32.totalorder %s3300_s26, %s3296_s25 }
  0x3f   : > { %p29_p6 = scmp.eq.s32.totalorder %s28_s13, 0  ;;  %p39_p10 = scmp.eq.s32.totalorder %s3304_s27, 0 }
  0x40   : > { %p4092_p3 = scmp.eq.s32.totalorder %s3389_s28, 1  ;;  %p3031_p7 = scmp.lt.s32.totalorder %s3304_s27, 2 }
  0x41   : > { %s3495_s16 = scalar_select %p29_p6, %s3300_s26, %s31_s12  }
  0x42   : > { %p3489_p5 = por %p4092_p3, %p38_p13  ;;  %p40_p9 = por %p39_p10, %p38_p13 }
  0x43   : > { %s256_s17 = sand.u32 1, %s3300_s26   ;;  %s2850_s14 = sshll.u32 %s3304_s27, 8 }
  0x44   : > { %s4093_s15 = scalar_select %p3489_p5, 1, 0 }
  0x45   : > { %s2807_s18 = sshll.u32 %s256_s17, 4  ;;  %s3502_s21 = scalar_lea.hbm %s4077_s0, %s2850_s14 }
  0x46   : > { %s260_s11 = scalar_lea.vmem [#allocation2], %s2807_s18  ;;  %p3506_p11 = pnand %p3031_p7, %p40_p9 }
  0x47   : > { %s267_s22 = sshll.u32 %s260_s11, 4  ;;  %s3510_s29 = scalar_lea.sflag [#allocation3], %s256_s17  ;;  %s3504_s22 = int_to_ptr.vmem [resolvable:$true] %s267_s22 }
  0x48   : > { %s3204_s12 = scalar_lea.hbm %s3502_s21, 256  ;;  %p3206_p0 = pneg %p3506_p11 }
  0x49   : > { %p3205_p12 = scmp.ne.s32.totalorder %s3502_s21, %s3204_s12  ;;  %s3209_s14 = scalar_lea.hbm %s4077_s0, 512 }
  0x4a   : > { %p3210_p13 = scmp.lt.u32.totalorder %s3502_s21, %s4077_s0  ;;  %p3211_p6 = scmp.lt.u32.totalorder %s3209_s14, %s3204_s12 }
  0x4b   : > { %p3207_p2 = pnand %p3206_p0, %p3205_p12  ;;  %p3213_p3 = scmp.lt.u32.totalorder %s3204_s12, %s3502_s21 }
  0x4c   : > { %p3212_p10 = por %p3211_p6, %p3210_p13 }
  0x4d   : > { %p3208_p1 = pneg %p3207_p2 }
  0x4e   : > { %p3214_p7 = por %p3213_p3, %p3212_p10 }
  0x50   : > { %p3215_p9 = pnand %p3214_p7, %p3208_p1 }
  0x52   : > { %3218 = shalt.err (!%p3215_p9)
}
  0x53   : > { %s3219_s17 = scalar_lea.vmem %s3504_s22, 256  ;;  %s3310_s11 = smov [#allocation2]  }
  0x54   : > { %p3220_p12 = scmp.ne.s32.totalorder %s3504_s22, %s3219_s17  ;;  %s3224_s13 = sshll.u32 %s3310_s11, 4  ;;  %s3225_s13 = int_to_ptr.vmem [resolvable:$false] %s3224_s13 }
  0x55   : > { %s3226_s18 = scalar_lea.vmem %s3225_s13, 512  ;;  %p3227_p4 = scmp.lt.s32.totalorder %s3504_s22, %s3225_s13 }
  0x56   : > { %p3222_p2 = pnand %p3220_p12, %p3206_p0  ;;  %p3228_p13 = scmp.lt.s32.totalorder %s3226_s18, %s3219_s17 }
  0x58   : > { %p3223_p5 = pneg %p3222_p2  ;;  %p3229_p6 = por %p3228_p13, %p3227_p4 }
  0x5a   : > { %p3230_p10 = pnand %p3229_p6, %p3223_p5 }
  0x5c   : > { %3233 = shalt.err (!%p3230_p10)
}
  0x5d   : > { %s3311_s12 = smov 128   ;;  %s3312_s14 = smov 8  }
  0x5e   : > { %3024 = dma.hbm_to_vmem [thread:$0]  (!%p3506_p11), %s3502_s21, 256, %s3504_s22, %s3510_s29, %s3311_s12, %s3311_s12, %s3312_s14  }
  0x5f   : > { %279 = sbr.rel (%p3408_p8) target bundleno = 2661 (0xa65), region = 48  ;;  %s3541_s19 = sand.u32 (!%p3408_p8), 1, %s3296_s25  }
  0x60   : > { %s2811_s20 = sshll.u32 (!%p3408_p8), %s3541_s19, 4  ;;  %s282_s17 = scalar_lea.sflag (!%p3408_p8), [#allocation3], %s3541_s19 }
  0x61   : > { %s3547_s11 = scalar_lea.vmem (!%p3408_p8), [#allocation2], %s2811_s20  ;;  %p4095_p4 = scmp.ne.s32.totalorder (!%p3408_p8), %s4088_s30, 0 }
  0x66   : > { %3279 = dma.done.wait (%p4095_p4), %s282_s17, 256  }
  0x67   : > { %3281 = vsyncadd (%p4095_p4), %s282_s17, 4294967040  ;;  %p4096_p5 = scmp.eq.s32.totalorder %s3389_s28, 0 }
  0x69   : > { %3283 = dma.done.wait (%p4096_p5), [#allocation6], 272   ;;  %p4097_p8 = pmov %p4096_p5 }
  0x6a   : > { %vm329_vm0 = vcmask 261120   ;;  %v327_v0 = vld [vmem:[%s3547_s11] sm:$0xff]  ;;  %v328_v1 = vld [vmem:[%s3547_s11 + $0x8] sm:$0xff]  ;;  %v3313_v15 = vmov 0.0   ;;  %vm3314_vm1 = vmmov 0   ;;  %s3315_s23 = smov 112   ;;  %v471_v60 = vlaneseq }
  0x6b   : > { %3285 = vsyncadd (%p4097_p8), [#allocation6], 4294967024  ;;  %v330_v2 = vsel %vm329_vm0, %v327_v0, 0.0  ;;  %v333_v3 = vsel %vm329_vm0, %v328_v1, 0.0  ;;  %v3102_v14 = vld [vmem:[#allocation5] sm:$0xff]   ;;  %2890 = vmatprep.subr.bf16.mxu0 %v3313_v15  ;;  %2894 = vmatprep.mubr.msk.bf16.mxu0 %vm3314_vm1, %v3313_v15  ;;  %v3103_v16 = vld [vmem:[#allocation5 + $0x8] sm:$0xff]  }
  0x6c   : > { %331 = vadd.xlane.f32.xlu0 %v330_v2  ;;  %2891 = vmatpush3.bf16.msra.mxu0 %v3102_v14  ;;  %v2815_v35 = vld [vmem:[%s4078_s1] ss:$0 sm:$0xff]  ;;  %v2817_v44 = vld [vmem:[#allocation7] ss:$0 sm:$0xff]  ;;  %s3316_s29 = smov 120   ;;  %s3317_s13 = smov 104  }
  0x6d   : > { %2898 = vmatprep.subr.bf16.mxu1 %v3313_v15  ;;  %2892 = vmatprep.subr.bf16.mxu0 %v3313_v15  ;;  %v2816_v39 = vld [vmem:[%s4079_s2] ss:$0 sm:$0xff]  ;;  %s3318_s18 = smov 96   ;;  %v3319_v58 = vmov 1983009808   ;;  %v472_v63 = vshrl.u32 %v471_v60, 7 }
  0x6e   : > { %2900 = vmatprep.mubr.msk.bf16.mxu1 %vm3314_vm1, %v3313_v15  ;;  %v469_v59 = vunpack.c.l.s4 %v3319_v58  ;;  %vm976_vm6 = vcmask 64512   ;;  %s3322_s12 = smov 64   ;;  %vm1212_vm7 = vcmask 1043456   ;;  %s3323_s21 = smov 16   ;;  %vm1543_vm8 = vcmask 130048  }
  0x6f   : > { %s3324_s22 = smov 8   ;;  %vm1545_vm9 = vcmask 195584   ;;  %p4098_p0 = scmp.ne.s32.totalorder %s4093_s15, 0 }
  0x70   : > { %334 = vadd.xlane.f32.xlu0 %v333_v3  ;;  %2893 = vmatpush3.bf16.msra.mxu0 %v3103_v16  ;;  %v470_v62 = vunpack.c.0.s8 %v469_v59 }
  0x71   : > { %2904 = vmatprep.subr.bf16.mxu0 %v3313_v15 }
  0xf9   : > { %v332_v4 = vpop.xlane.xlu0 %331 }
  0xfa   : > { %v337_v5 = vmul.f32 0.03125, %v332_v4  ;;  %v3604_v4 = vsub.s32 %v470_v62, %v472_v63 }
  0xfc   : > { %v339_v6 = vsub.f32 %v327_v0, %v337_v5  ;;  %v3320_v0 = vmov 1934713408  }
  0xfd   : > { %v335_v7 = vpop.xlane.xlu0 %334 }
  0xfe   : > { %v338_v8 = vmul.f32 0.03125, %v335_v7  ;;  %v341_v9 = vmul.f32 %v339_v6, %v339_v6 }
 0x100   : > { %v340_v10 = vsub.f32 %v328_v1, %v338_v8  ;;  %v343_v11 = vsel %vm329_vm0, %v341_v9, 0.0  ;;  %v486_v1 = vunpack.c.l.s4 %v3320_v0 }
 0x101   : > { %344 = vadd.xlane.f32.xlu1 %v343_v11 }
 0x102   : > { %v342_v12 = vmul.f32 %v340_v10, %v340_v10  ;;  %v487_v5 = vunpack.c.0.s8 %v486_v1 }
 0x104   : > { %v346_v13 = vsel %vm329_vm0, %v342_v12, 0.0  ;;  %v3612_v12 = vsub.s32 %v487_v5, %v472_v63 }
 0x105   : > { %347 = vadd.xlane.f32.xlu1 %v346_v13 }
 0x18e   : > { %v345_v17 = vpop.xlane.xlu1 %344 }
 0x18f   : > { %v349_v18 = vmul.f32 0.032258064, %v345_v17 }
 0x191   : > { %3106 = vrsqrt.f32 %v349_v18  ;;  %vm353_vm2 = vcmp.eq.f32.partialorder %v349_v18, inf  ;;  %v356_v23 = vand.u32 2147483648, %v349_v18  ;;  %vm355_vm3 = vcmp.eq.f32.partialorder %v349_v18, 0.0 }
 0x192   : > { %v348_v19 = vpop.xlane.xlu1 %347 }
 0x193   : > { %v350_v20 = vmul.f32 0.032258064, %v348_v19 }
 0x195   : > { %3108 = vrsqrt.f32 %v350_v20  ;;  %vm360_vm4 = vcmp.eq.f32.partialorder %v350_v20, inf  ;;  %v363_v29 = vand.u32 2147483648, %v350_v20  ;;  %vm362_vm5 = vcmp.eq.f32.partialorder %v350_v20, 0.0 }
 0x19b   : > { %v3107_v21 = vpop.eup %3106 }
 0x19c   : > { %v352_v22 = vmul.f32 %v3107_v21, %v349_v18 }
 0x19e   : > { %v354_v24 = vsel %vm353_vm2, %v349_v18, %v352_v22 }
 0x19f   : > { %v3109_v25 = vpop.eup %3108  ;;  %v357_v26 = vsel %vm355_vm3, %v356_v23, %v354_v24 }
 0x1a0   : > { %v366_v27 = vadd.f32 1e-06, %v357_v26  ;;  %v359_v28 = vmul.f32 %v3109_v25, %v350_v20 }
 0x1a2   : > { %3110 = vrcp.f32 %v366_v27  ;;  %v361_v30 = vsel %vm360_vm4, %v350_v20, %v359_v28 }
 0x1a3   : > { %v364_v31 = vsel %vm362_vm5, %v363_v29, %v361_v30  ;;  %v3321_v29 = vmov 0  }
 0x1a4   : > { %v367_v32 = vadd.f32 1e-06, %v364_v31 }
 0x1a6   : > { %3112 = vrcp.f32 %v367_v32 }
 0x1ac   : > { %v3111_v33 = vpop.eup %3110 }
 0x1ad   : > { %v369_v34 = vmul.f32 %v3111_v33, %v339_v6 }
 0x1af   : > { %v378_v38 = vmul.f32 %v2815_v35, %v369_v34 }
 0x1b0   : > { %v3113_v36 = vpop.eup %3112 }
 0x1b1   : > { %v371_v37 = vmul.f32 %v3113_v36, %v340_v10  ;;  %v387_v41 = vadd.f32 %v2816_v39, %v378_v38 }
 0x1b3   : > { %v379_v40 = vmul.f32 %v2815_v35, %v371_v37 }
 0x1b5   : > { %v388_v42 = vadd.f32 %v2816_v39, %v379_v40 }
 0x1b7   : > { %v389_v43 = vpack.c.bf16 %v388_v42, %v387_v41 }
 0x1b9   : > { %2895 = vmatmul.mubr.msk.bf16.vlgmr.msra.gmra.mrb[0].mxu0 %vm329_vm0, %v389_v43 }
 0x1ba   : > { %2906 = vmatprep.mubr.msk.bf16.mxu0 %vm3314_vm1, %v3313_v15 }
 0x28c   : > { %v450_v45 = vpop.f32.mrb[0].mxu0 }
 0x28d   : > { %v451_v46 = vadd.f32 %v2817_v44, %v450_v45  ;;  %v2896_v47 = vpop.f32.mrb[1].mxu0 }
 0x28e   : > { %v453_v48 = vpop.f32.mrb[2].mxu0 }
 0x28f   : > { %v454_v49 = vadd.f32 %v2817_v44, %v453_v48  ;;  %v2897_v50 = vpop.f32.mrb[3].mxu0  ;;  %v457_v51 = vmul.f32 0.35355338, %v451_v46 }
 0x291   : > { %v458_v52 = vmul.f32 0.35355338, %v454_v49  ;;  %v3580_v53 = vpack.c.bf16 %v454_v49, %v451_v46 }
 0x293   : > { %v3582_v54 = vpack.c.bf16 %v458_v52, %v457_v51  ;;  %632 = vrot.lane.b32.xlu1 %v3580_v53, %s3315_s23  ;;  %630 = vrot.lane.b32.xlu0 %v3580_v53, %s3316_s29 }
 0x295   : > { %v474_v19 = vrot.slane %v3582_v54, %v3604_v4 }
 0x297   : > { %634 = vrot.lane.b32.xlu1 %v3580_v53, %s3317_s13 }
 0x29b   : > { %636 = vrot.lane.b32.xlu1 %v3580_v53, %s3318_s18 }
 0x305   : > { %v3589_v55 = vpop.permute.xlu1 %632  ;;  %v3591_v56 = vpop.permute.xlu0 %630 }
 0x306   : > { %640 = vrot.lane.b32.xlu1 %v3589_v55, %s3318_s18  ;;  %638 = vrot.lane.b32.xlu0 %v3591_v56, %s3318_s18 }
 0x309   : > { %v3597_v57 = vpop.permute.xlu1 %634 }
 0x30a   : > { %642 = vrot.lane.b32.xlu0 %v3597_v57, %s3318_s18  ;;  %462 = vrot.lane.b32.xlu1 %v3582_v54, %s3316_s29 }
 0x30d   : > { %v637_v61 = vpop.permute.xlu1 %636 }
 0x30e   : > { %464 = vrot.lane.b32.xlu0 %v3582_v54, %s3315_s23  ;;  %466 = vrot.lane.b32.xlu1 %v3582_v54, %s3317_s13  ;;  %v651_v10 = vrot.slane %v637_v61, %v3604_v4  ;;  %s3325_s23 = smov 24  }
 0x378   : > { %v641_v2 = vpop.permute.xlu1 %640  ;;  %v639_v3 = vpop.permute.xlu0 %638 }
 0x379   : > { %v659_v6 = vrot.slane %v641_v2, %v3604_v4  ;;  %v685_v11 = vrot.slane %v639_v3, %v3604_v4 }
 0x37b   : > { %v660_v13 = vcombine.low %v651_v10, %v659_v6  ;;  %v661_v18 = vcombine.high %v651_v10, %v659_v6 }
 0x37c   : > { %v643_v7 = vpop.permute.xlu0 %642  ;;  %v3608_v9 = vpop.permute.xlu1 %462 }
 0x37d   : > { %v693_v8 = vrot.slane %v643_v7, %v3604_v4  ;;  %v668_v26 = vrot.slane %v660_v13, %v3612_v12  ;;  %v675_v27 = vrot.slane %v661_v18, %v3612_v12  ;;  %v508_v35 = vrot.slane %v3608_v9, %v3604_v4 }
 0x37f   : > { %v694_v14 = vcombine.low %v685_v11, %v693_v8  ;;  %v695_v16 = vcombine.high %v685_v11, %v693_v8  ;;  %v676_v34 = vcombine.high %v668_v26, %v3321_v29  ;;  %v677_v36 = vcombine.high %v675_v27, %v3321_v29 }
 0x380   : > { %v3614_v17 = vpop.permute.xlu0 %464  ;;  %v3622_v25 = vpop.permute.xlu1 %466  ;;  %v716_v37 = vshrl.u32 %v668_v26, 16  ;;  %v732_v45 = vshrl.u32 %v675_v27, 16 }
 0x381   : > { %v482_v20 = vrot.slane %v3614_v17, %v3604_v4  ;;  %v702_v21 = vrot.slane %v694_v14, %v3612_v12  ;;  %v709_v22 = vrot.slane %v695_v16, %v3612_v12  ;;  %v516_v28 = vrot.slane %v3622_v25, %v3604_v4 }
 0x382   : > { %v724_v44 = vshrl.u32 %v676_v34, 16  ;;  %v740_v6 = vshrl.u32 %v677_v36, 16 }
 0x383   : > { %v483_v23 = vcombine.low %v474_v19, %v482_v20  ;;  %v484_v24 = vcombine.high %v474_v19, %v482_v20  ;;  %v710_v30 = vcombine.high %v702_v21, %v3321_v29  ;;  %v711_v31 = vcombine.high %v709_v22, %v3321_v29 }
 0x384   : > { %v517_v38 = vcombine.low %v508_v35, %v516_v28  ;;  %v518_v39 = vcombine.high %v508_v35, %v516_v28  ;;  %v714_v48 = vpack.i.b16 %v702_v21, %v668_v26  ;;  %v717_v49 = vshrl.u32 %v702_v21, 16 }
 0x385   : > { %v491_v32 = vrot.slane %v483_v23, %v3612_v12  ;;  %v498_v33 = vrot.slane %v484_v24, %v3612_v12  ;;  %v722_v40 = vpack.i.b16 %v710_v30, %v676_v34  ;;  %v738_v41 = vpack.i.b16 %v711_v31, %v677_v36 }
 0x386   : > { %v525_v46 = vrot.slane %v517_v38, %v3612_v12  ;;  %v532_v47 = vrot.slane %v518_v39, %v3612_v12  ;;  %v730_v50 = vpack.i.b16 %v709_v22, %v675_v27  ;;  %v733_v51 = vshrl.u32 %v709_v22, 16 }
 0x387   : > { %v499_v42 = vcombine.high %v491_v32, %v3321_v29  ;;  %v500_v43 = vcombine.high %v498_v33, %v3321_v29  ;;  %v725_v52 = vshrl.u32 %v710_v30, 16  ;;  %v741_v58 = vshrl.u32 %v711_v31, 16 }
 0x388   : > { %v533_v59 = vcombine.high %v525_v46, %v3321_v29  ;;  %v534_v60 = vcombine.high %v532_v47, %v3321_v29  ;;  %v539_v61 = vshrl.u32 %v491_v32, 16  ;;  %v752_v0 = vcombine.low %v722_v40, %v738_v41 }
 0x389   : > { %v547_v62 = vshrl.u32 %v499_v42, 16  ;;  %v563_v63 = vshrl.u32 %v500_v43, 16  ;;  %v555_v1 = vshrl.u32 %v498_v33, 16  ;;  %v540_v2 = vshrl.u32 %v525_v46, 16 }
 0x38a   : > { %v548_v3 = vshrl.u32 %v533_v59, 16  ;;  %v556_v5 = vshrl.u32 %v532_v47, 16  ;;  %v744_v7 = vcombine.low %v714_v48, %v730_v50  ;;  %v564_v8 = vshrl.u32 %v534_v60, 16 }
 0x38b   : > { %v718_v10 = vpack.i.b16 %v717_v49, %v716_v37  ;;  %v726_v11 = vpack.i.b16 %v725_v52, %v724_v44  ;;  %v734_v13 = vpack.i.b16 %v733_v51, %v732_v45  ;;  %v742_v14 = vpack.i.b16 %v741_v58, %v740_v6 }
 0x38c   : > { %v549_v16 = vpack.i.b16 %v548_v3, %v547_v62  ;;  %v565_v18 = vpack.i.b16 %v564_v8, %v563_v63  ;;  %v759_v19 = vrot.slane %v752_v0, %v3604_v4  ;;  %v541_v20 = vpack.i.b16 %v540_v2, %v539_v61 }
 0x38d   : > { %v545_v21 = vpack.i.b16 %v533_v59, %v499_v42  ;;  %v557_v22 = vpack.i.b16 %v556_v5, %v555_v1  ;;  %v561_v23 = vpack.i.b16 %v534_v60, %v500_v43  ;;  %v751_v24 = vrot.slane %v744_v7, %v3604_v4 }
 0x38e   : > { %v537_v26 = vpack.i.b16 %v525_v46, %v491_v32  ;;  %v553_v27 = vpack.i.b16 %v532_v47, %v498_v33  ;;  %v600_v28 = vcombine.low %v549_v16, %v565_v18  ;;  %v769_v31 = vcombine.low %v718_v10, %v734_v13 }
 0x38f   : > { %v760_v30 = vcombine.low %v751_v24, %v759_v19  ;;  %v575_v34 = vcombine.low %v545_v21, %v561_v23  ;;  %v592_v35 = vcombine.low %v541_v20, %v557_v22  ;;  %v777_v36 = vcombine.low %v726_v11, %v742_v14 }
 0x390   : > { %v567_v37 = vcombine.low %v537_v26, %v553_v27  ;;  %v776_v38 = vrot.slane %v769_v31, %v3604_v4  ;;  %v607_v41 = vrot.slane %v600_v28, %v3604_v4 }
 0x391   : > { %v784_v39 = vrot.slane %v777_v36, %v3604_v4  ;;  %v767_v40 = vrot.slane %v760_v30, %v3612_v12  ;;  %v582_v43 = vrot.slane %v575_v34, %v3604_v4  ;;  %v599_v32 = vrot.slane %v592_v35, %v3604_v4 }
 0x392   : > { %v574_v33 = vrot.slane %v567_v37, %v3604_v4 }
 0x393   : > { %v785_v42 = vcombine.low %v776_v38, %v784_v39  ;;  %v608_v45 = vcombine.low %v599_v32, %v607_v41  ;;  %v797_v46 = vshrl.u32 %v767_v40, 16  ;;  %v768_v59 = vcombine.high %v767_v40, %v3321_v29 }
 0x394   : > { %v583_v49 = vcombine.low %v574_v33, %v582_v43 }
 0x395   : > { %v792_v44 = vrot.slane %v785_v42, %v3612_v12  ;;  %v615_v58 = vrot.slane %v608_v45, %v3612_v12  ;;  %v803_v1 = vshrl.u32 %v768_v59, 16 }
 0x396   : > { %v590_v61 = vrot.slane %v583_v49, %v3612_v12 }
 0x397   : > { %v796_v47 = vpack.i.b16 %v792_v44, %v767_v40  ;;  %v798_v48 = vshrl.u32 %v792_v44, 16  ;;  %v793_v50 = vcombine.high %v792_v44, %v3321_v29  ;;  %v621_v0 = vshrl.u32 %v615_v58, 16 }
 0x398   : > { %v619_v2 = vpack.i.b16 %v615_v58, %v590_v61  ;;  %v620_v3 = vshrl.u32 %v590_v61, 16  ;;  %v616_v8 = vcombine.high %v615_v58, %v3321_v29  ;;  %v591_v11 = vcombine.high %v590_v61, %v3321_v29 }
 0x399   : > { %v981_v51 = vsel %vm976_vm6, %v796_v47, 0  ;;  %v799_v52 = vpack.i.b16 %v798_v48, %v797_v46  ;;  %v804_v62 = vshrl.u32 %v793_v50, 16  ;;  %v802_v63 = vpack.i.b16 %v793_v50, %v768_v59 }
 0x39a   : > { %2899 = vmatpush3.bf16.xpose.msra.mxu1 %v981_v51  ;;  %v622_v7 = vpack.i.b16 %v621_v0, %v620_v3  ;;  %v627_v13 = vshrl.u32 %v616_v8, 16  ;;  %v625_v14 = vpack.i.b16 %v616_v8, %v591_v11  ;;  %v626_v16 = vshrl.u32 %v591_v11, 16 }
 0x39b   : > { %v1027_v60 = vsel %vm976_vm6, %v799_v52, 0  ;;  %2910 = vmatprep.subr.bf16.mxu1 %v3313_v15  ;;  %v805_v5 = vpack.i.b16 %v804_v62, %v803_v1  ;;  %v1073_v6 = vsel %vm976_vm6, %v802_v63, 0 }
 0x39c   : > { %2905 = vmatpush3.bf16.xpose.msra.mxu0 %v1027_v60  ;;  %v628_v18 = vpack.i.b16 %v627_v13, %v626_v16 }
 0x39d   : > { %2916 = vmatprep.subr.bf16.mxu0 %v3313_v15  ;;  %v1119_v10 = vsel %vm976_vm6, %v805_v5, 0 }
 0x3a1   : > { %2901 = vmatmul.mubr.msk.bf16.vlgmr.msra.gmra.mrb[0].mxu1 %vm976_vm6, %v619_v2 }
 0x3a2   : > { %2911 = vmatpush3.bf16.xpose.msra.mxu1 %v1073_v6  ;;  %2912 = vmatprep.mubr.msk.bf16.mxu1 %vm3314_vm1, %v3313_v15 }
 0x3a3   : > { %2907 = vmatmul.mubr.msk.bf16.vlgmr.msra.gmra.mrb[4].mxu0 %vm976_vm6, %v622_v7  ;;  %2922 = vmatprep.subr.bf16.mxu1 %v3313_v15 }
 0x3a4   : > { %2917 = vmatpush3.bf16.xpose.msra.mxu0 %v1119_v10  ;;  %2918 = vmatprep.mubr.msk.bf16.mxu0 %vm3314_vm1, %v3313_v15 }
 0x3a5   : > { %2928 = vmatprep.subr.bf16.mxu0 %v3313_v15 }
 0x3a9   : > { %2913 = vmatmul.mubr.msk.bf16.vlgmr.msra.gmra.mrb[4].mxu1 %vm976_vm6, %v625_v14 }
 0x3aa   : > { %2924 = vmatprep.mubr.msk.bf16.mxu1 %vm3314_vm1, %v3313_v15 }
 0x3ab   : > { %2919 = vmatmul.mubr.msk.bf16.vlgmr.msra.gmra.mrb[8].mxu0 %vm976_vm6, %v628_v18 }
 0x3ac   : > { %2930 = vmatprep.mubr.msk.bf16.mxu0 %vm3314_vm1, %v3313_v15 }
 0x474   : > { %v1017_v19 = vpop.f32.mrb[0].mxu1 }
 0x475   : > { %v2902_v20 = vpop.f32.mrb[1].mxu1  ;;  %v1161_v21 = vsel %vm976_vm6, %v1017_v19, -inf }
 0x476   : > { %1162 = vmax.xlane.f32.xlu0 %v1161_v21  ;;  %v1020_v22 = vpop.f32.mrb[2].mxu1  ;;  %v1063_v23 = vpop.f32.mrb[4].mxu0 }
 0x477   : > { %v2903_v24 = vpop.f32.mrb[3].mxu1  ;;  %v2908_v26 = vpop.f32.mrb[5].mxu0  ;;  %v1164_v27 = vsel %vm976_vm6, %v1063_v23, -inf }
 0x478   : > { %1165 = vmax.xlane.f32.xlu1 %v1164_v27  ;;  %v1066_v28 = vpop.f32.mrb[6].mxu0 }
 0x479   : > { %v2909_v30 = vpop.f32.mrb[7].mxu0 }
 0x47c   : > { %v1109_v31 = vpop.f32.mrb[4].mxu1 }
 0x47d   : > { %v2914_v34 = vpop.f32.mrb[5].mxu1  ;;  %v1167_v35 = vsel %vm976_vm6, %v1109_v31, -inf }
 0x47e   : > { %1168 = vmax.xlane.f32.xlu0 %v1167_v35  ;;  %v1112_v36 = vpop.f32.mrb[6].mxu1  ;;  %v1155_v37 = vpop.f32.mrb[8].mxu0 }
 0x47f   : > { %v2915_v38 = vpop.f32.mrb[7].mxu1  ;;  %v2920_v39 = vpop.f32.mrb[9].mxu0  ;;  %v1170_v42 = vsel %vm976_vm6, %v1155_v37, -inf }
 0x480   : > { %v1158_v40 = vpop.f32.mrb[10].mxu0 }
 0x481   : > { %v2921_v41 = vpop.f32.mrb[11].mxu0 }
 0x482   : > { %1171 = vmax.xlane.f32.xlu0 %v1170_v42 }
 0x489   : > { %808 = vrot.lane.b32.xlu1 %v3591_v56, %s3322_s12 }
 0x48d   : > { %810 = vrot.lane.b32.xlu1 %v3589_v55, %s3322_s12 }
 0x491   : > { %812 = vrot.lane.b32.xlu1 %v3597_v57, %s3322_s12 }
 0x498   : > { %806 = vrot.lane.b32.xlu0 %v3580_v53, %s3322_s12 }
 0x503   : > { %v1163_v43 = vpop.xlane.xlu0 %1162 }
 0x504   : > { %v1173_v32 = vsub.f32 %v1017_v19, %v1163_v43 }
 0x505   : > { %v1166_v33 = vpop.xlane.xlu1 %1165 }
 0x506   : > { %v1177_v44 = vmul.f32 1.442695, %v1173_v32  ;;  %v1174_v45 = vsub.f32 %v1063_v23, %v1166_v33 }
 0x508   : > { %3114 = vpow2.f32 %v1177_v44  ;;  %v1179_v46 = vmul.f32 1.442695, %v1174_v45 }
 0x509   : > { %v809_v47 = vpop.permute.xlu1 %808 }
 0x50a   : > { %3116 = vpow2.f32 %v1179_v46  ;;  %v855_v61 = vrot.slane %v809_v47, %v3604_v4 }
 0x50b   : > { %v1169_v48 = vpop.xlane.xlu0 %1168 }
 0x50c   : > { %v1175_v49 = vsub.f32 %v1109_v31, %v1169_v48 }
 0x50d   : > { %v811_v50 = vpop.permute.xlu1 %810 }
 0x50e   : > { %v1181_v51 = vmul.f32 1.442695, %v1175_v49  ;;  %v829_v0 = vrot.slane %v811_v50, %v3604_v4 }
 0x50f   : > { %v1172_v52 = vpop.xlane.xlu0 %1171 }
 0x510   : > { %3118 = vpow2.f32 %v1181_v51  ;;  %v1176_v58 = vsub.f32 %v1155_v37, %v1172_v52 }
 0x511   : > { %v813_v59 = vpop.permute.xlu1 %812 }
 0x512   : > { %v3690_v60 = vpop.eup %3114  ;;  %v1183_v62 = vmul.f32 1.442695, %v1176_v58  ;;  %v863_v63 = vrot.slane %v813_v59, %v3604_v4  ;;  %v1714_v59 = vrot.slane %v3591_v56, 4 }
 0x513   : > { %v807_v1 = vpop.permute.xlu0 %806  ;;  %v1185_v2 = vsel %vm976_vm6, %v3690_v60, 0.0 }
 0x514   : > { %v3697_v3 = vpop.eup %3116  ;;  %3120 = vpow2.f32 %v1183_v62  ;;  %v864_v5 = vcombine.low %v855_v61, %v863_v63  ;;  %v865_v6 = vcombine.high %v855_v61, %v863_v63  ;;  %v821_v7 = vrot.slane %v807_v1, %v3604_v4  ;;  %1186 = vadd.xlane.f32.xlu0 %v1185_v2 }
 0x515   : > { %v1188_v8 = vsel %vm976_vm6, %v3697_v3, 0.0  ;;  %v1715_v1 = vrot.slane %v3589_v55, 4 }
 0x516   : > { %v872_v10 = vrot.slane %v864_v5, %v3612_v12  ;;  %v879_v11 = vrot.slane %v865_v6, %v3612_v12  ;;  %v830_v13 = vcombine.low %v821_v7, %v829_v0  ;;  %v831_v14 = vcombine.high %v821_v7, %v829_v0  ;;  %1189 = vadd.xlane.f32.xlu1 %v1188_v8 }
 0x518   : > { %v880_v16 = vcombine.high %v872_v10, %v3321_v29  ;;  %v838_v18 = vrot.slane %v830_v13, %v3612_v12  ;;  %v845_v19 = vrot.slane %v831_v14, %v3612_v12  ;;  %v881_v21 = vcombine.high %v879_v11, %v3321_v29 }
 0x519   : > { %v887_v22 = vshrl.u32 %v872_v10, 16  ;;  %v903_v23 = vshrl.u32 %v879_v11, 16 }
 0x51a   : > { %v3707_v20 = vpop.eup %3118  ;;  %v846_v24 = vcombine.high %v838_v18, %v3321_v29  ;;  %v847_v26 = vcombine.high %v845_v19, %v3321_v29  ;;  %v884_v27 = vpack.i.b16 %v872_v10, %v838_v18  ;;  %v886_v28 = vshrl.u32 %v838_v18, 16 }
 0x51b   : > { %v895_v30 = vshrl.u32 %v880_v16, 16  ;;  %v900_v31 = vpack.i.b16 %v879_v11, %v845_v19  ;;  %v902_v34 = vshrl.u32 %v845_v19, 16  ;;  %v1191_v35 = vsel %vm976_vm6, %v3707_v20, 0.0 }
 0x51c   : > { %v888_v36 = vpack.i.b16 %v887_v22, %v886_v28  ;;  %v892_v37 = vpack.i.b16 %v880_v16, %v846_v24  ;;  %v894_v38 = vshrl.u32 %v846_v24, 16  ;;  %v908_v39 = vpack.i.b16 %v881_v21, %v847_v26  ;;  %1192 = vadd.xlane.f32.xlu0 %v1191_v35 }
 0x51d   : > { %v911_v41 = vshrl.u32 %v881_v21, 16  ;;  %v904_v42 = vpack.i.b16 %v903_v23, %v902_v34  ;;  %v910_v43 = vshrl.u32 %v847_v26, 16  ;;  %v914_v32 = vcombine.low %v884_v27, %v900_v31 }
 0x51e   : > { %v3714_v40 = vpop.eup %3120  ;;  %v896_v33 = vpack.i.b16 %v895_v30, %v894_v38  ;;  %v922_v44 = vcombine.low %v892_v37, %v908_v39  ;;  %v1716_v16 = vrot.slane %v3597_v57, 4  ;;  %v1713_v21 = vrot.slane %v3580_v53, 4 }
 0x51f   : > { %v1194_v45 = vsel %vm976_vm6, %v3714_v40, 0.0  ;;  %v912_v46 = vpack.i.b16 %v911_v41, %v910_v43  ;;  %v939_v47 = vcombine.low %v888_v36, %v904_v42  ;;  %v921_v48 = vrot.slane %v914_v32, %v3604_v4 }
 0x520   : > { %1195 = vadd.xlane.f32.xlu0 %v1194_v45  ;;  %v929_v49 = vrot.slane %v922_v44, %v3604_v4  ;;  %v1549_v22 = vrot.slane %v3614_v17, 4  ;;  %v1547_v23 = vrot.slane %v3582_v54, 4  ;;  %v1550_v24 = vrot.slane %v3622_v25, 4 }
 0x521   : > { %v947_v50 = vcombine.low %v896_v33, %v912_v46  ;;  %v946_v52 = vrot.slane %v939_v47, %v3604_v4  ;;  %v1548_v26 = vrot.slane %v3608_v9, 4 }
 0x522   : > { %v930_v51 = vcombine.low %v921_v48, %v929_v49  ;;  %v1566_v27 = vrot.slane %v1549_v22, %v3604_v4  ;;  %v1558_v30 = vrot.slane %v1547_v23, %v3604_v4  ;;  %v1600_v31 = vrot.slane %v1550_v24, %v3604_v4 }
 0x523   : > { %v954_v58 = vrot.slane %v947_v50, %v3604_v4  ;;  %v1592_v35 = vrot.slane %v1548_v26, %v3604_v4 }
 0x524   : > { %v937_v61 = vrot.slane %v930_v51, %v3612_v12  ;;  %v1567_v36 = vcombine.low %v1558_v30, %v1566_v27  ;;  %v1568_v17 = vcombine.high %v1558_v30, %v1566_v27 }
 0x525   : > { %v955_v62 = vcombine.low %v946_v52, %v954_v58  ;;  %v1601_v37 = vcombine.low %v1592_v35, %v1600_v31  ;;  %v1602_v54 = vcombine.high %v1592_v35, %v1600_v31 }
 0x526   : > { %v3728_v63 = vcombine.high %v937_v61, %v3321_v29  ;;  %v967_v5 = vshrl.u32 %v937_v61, 16  ;;  %v3761_v25 = vrot.slane %v1567_v36, %v3612_v12  ;;  %v3764_v9 = vrot.slane %v1568_v17, %v3612_v12 }
 0x527   : > { %1719 = vrot.lane.b32.xlu1 %v1714_v59, %s3318_s18  ;;  %v962_v0 = vrot.slane %v955_v62, %v3612_v12  ;;  %v3767_v39 = vrot.slane %v1601_v37, %v3612_v12  ;;  %v3770_v42 = vrot.slane %v1602_v54, %v3612_v12 }
 0x528   : > { %v973_v8 = vshrl.u32 %v3728_v63, 16  ;;  %v3774_v33 = vcombine.high %v3761_v25, %v3321_v29  ;;  %v3778_v44 = vcombine.high %v3764_v9, %v3321_v29  ;;  %v1623_v47 = vshrl.u32 %v3761_v25, 16 }
 0x529   : > { %v966_v2 = vpack.i.b16 %v962_v0, %v937_v61  ;;  %v968_v6 = vshrl.u32 %v962_v0, 16  ;;  %v963_v7 = vcombine.high %v962_v0, %v3321_v29  ;;  %v3784_v48 = vcombine.high %v3767_v39, %v3321_v29 }
 0x52a   : > { %v3788_v50 = vcombine.high %v3770_v42, %v3321_v29  ;;  %v1631_v61 = vshrl.u32 %v3774_v33, 16  ;;  %v1647_v0 = vshrl.u32 %v3778_v44, 16 }
 0x52b   : > { %1721 = vrot.lane.b32.xlu1 %v1715_v1, %s3318_s18  ;;  %v1214_v10 = vsel %vm1212_vm7, %v966_v2, 0  ;;  %v969_v11 = vpack.i.b16 %v968_v6, %v967_v5  ;;  %v972_v13 = vpack.i.b16 %v963_v7, %v3728_v63  ;;  %v974_v14 = vshrl.u32 %v963_v7, 16 }
 0x52c   : > { %2923 = vmatpush3.bf16.msra.mxu1 %v1214_v10  ;;  %v1624_v2 = vshrl.u32 %v3767_v39, 16  ;;  %v1632_v6 = vshrl.u32 %v3784_v48, 16  ;;  %v1640_v7 = vshrl.u32 %v3770_v42, 16  ;;  %v1629_v23 = vpack.i.b16 %v3784_v48, %v3774_v33 }
 0x52d   : > { %v1260_v18 = vsel %vm1212_vm7, %v969_v11, 0  ;;  %2934 = vmatprep.subr.bf16.mxu1 %v3313_v15  ;;  %v3742_v19 = vpack.i.b16 %v974_v14, %v973_v8  ;;  %v1306_v5 = vsel %vm1212_vm7, %v972_v13, 0  ;;  %v1648_v14 = vshrl.u32 %v3788_v50, 16 }
 0x52e   : > { %2929 = vmatpush3.bf16.msra.mxu0 %v1260_v18  ;;  %v1645_v30 = vpack.i.b16 %v3788_v50, %v3778_v44 }
 0x52f   : > { %1723 = vrot.lane.b32.xlu1 %v1716_v16, %s3318_s18  ;;  %2940 = vmatprep.subr.bf16.mxu0 %v3313_v15  ;;  %v1352_v13 = vsel %vm1212_vm7, %v3742_v19, 0  ;;  %v1649_v54 = vpack.i.b16 %v1648_v14, %v1647_v0 }
 0x530   : > { %v1659_v14 = vcombine.low %v1629_v23, %v1645_v30 }
 0x536   : > { %1717 = vrot.lane.b32.xlu0 %v1713_v21, %s3318_s18  ;;  %s2851_s18 = sshll.u32 %s3389_s28, 8  ;;  %s2697_s28 = scalar_lea.sflag [#allocation4], %s3541_s19 }
 0x537   : > { %s4027_s9 = scalar_lea.hbm %s4084_s7, %s2851_s18 }
 0x5a1   : > { %v1187_v28 = vpop.xlane.xlu0 %1186 }
 0x5a2   : > { %3122 = vrcp.f32 %v1187_v28  ;;  %v1625_v28 = vpack.i.b16 %v1624_v2, %v1623_v47 }
 0x5a3   : > { %v1190_v34 = vpop.xlane.xlu1 %1189 }
 0x5a4   : > { %3124 = vrcp.f32 %v1190_v34  ;;  %v1633_v34 = vpack.i.b16 %v1632_v6, %v1631_v61 }
 0x5a7   : > { %v1720_v38 = vpop.permute.xlu1 %1719 }
 0x5a8   : > { %v1766_v62 = vrot.slane %v1720_v38, %v3604_v4 }
 0x5a9   : > { %v1193_v41 = vpop.xlane.xlu0 %1192 }
 0x5aa   : > { %3126 = vrcp.f32 %v1193_v41 }
 0x5ab   : > { %v1722_v43 = vpop.permute.xlu1 %1721 }
 0x5ac   : > { %v3123_v32 = vpop.eup %3122  ;;  %v1740_v18 = vrot.slane %v1722_v43, %v3604_v4 }
 0x5ad   : > { %v1201_v45 = vmul.f32 %v3123_v32, %v3690_v60  ;;  %v1196_v49 = vpop.xlane.xlu0 %1195  ;;  %v1639_v60 = vshrl.u32 %v3764_v9, 16 }
 0x5ae   : > { %v3125_v46 = vpop.eup %3124  ;;  %3128 = vrcp.f32 %v1196_v49 }
 0x5af   : > { %v1202_v51 = vmul.f32 %v3125_v46, %v3697_v3  ;;  %v1724_v52 = vpop.permute.xlu1 %1723  ;;  %v1205_v58 = vpack.c.bf16 %v1201_v45, %v1201_v45  ;;  %v1641_v37 = vpack.i.b16 %v1640_v7, %v1639_v60 }
 0x5b0   : > { %v1774_v63 = vrot.slane %v1724_v52, %v3604_v4 }
 0x5b1   : > { %2925 = vmatmul.mubr.msk.bf16.vlgmr.msra.gmra.mrb[8].mxu1 %vm976_vm6, %v1205_v58  ;;  %v1206_v3 = vpack.c.bf16 %v1202_v51, %v1202_v51  ;;  %v1718_v11 = vpop.permute.xlu0 %1717 }
 0x5b2   : > { %v1775_v8 = vcombine.low %v1766_v62, %v1774_v63  ;;  %v1776_v10 = vcombine.high %v1766_v62, %v1774_v63  ;;  %2935 = vmatpush3.bf16.msra.mxu1 %v1306_v5  ;;  %2936 = vmatprep.mubr.msk.bf16.mxu1 %vm3314_vm1, %v3313_v15  ;;  %v1732_v22 = vrot.slane %v1718_v11, %v3604_v4 }
 0x5b3   : > { %2931 = vmatmul.mubr.msk.bf16.vlgmr.msra.gmra.mrb[12].mxu0 %vm976_vm6, %v1206_v3  ;;  %2946 = vmatprep.subr.bf16.mxu1 %v3313_v15  ;;  %v1621_v3 = vpack.i.b16 %v3767_v39, %v3761_v25 }
 0x5b4   : > { %v1783_v24 = vrot.slane %v1775_v8, %v3612_v12  ;;  %v1790_v26 = vrot.slane %v1776_v10, %v3612_v12  ;;  %2941 = vmatpush3.bf16.msra.mxu0 %v1352_v13  ;;  %2942 = vmatprep.mubr.msk.bf16.mxu0 %vm3314_vm1, %v3313_v15  ;;  %v3127_v27 = vpop.eup %3126  ;;  %v1741_v31 = vcombine.low %v1732_v22, %v1740_v18 }
 0x5b5   : > { %v1742_v19 = vcombine.high %v1732_v22, %v1740_v18  ;;  %2952 = vmatprep.subr.bf16.mxu0 %v3313_v15  ;;  %v1203_v35 = vmul.f32 %v3127_v27, %v3707_v20  ;;  %v1684_v8 = vcombine.low %v1633_v34, %v1649_v54  ;;  %v1676_v13 = vcombine.low %v1625_v28, %v1641_v37 }
 0x5b6   : > { %v1791_v36 = vcombine.high %v1783_v24, %v3321_v29  ;;  %v1792_v17 = vcombine.high %v1790_v26, %v3321_v29  ;;  %v1749_v38 = vrot.slane %v1741_v31, %v3612_v12  ;;  %v1798_v43 = vshrl.u32 %v1783_v24, 16 }
 0x5b7   : > { %v1756_v41 = vrot.slane %v1742_v19, %v3612_v12  ;;  %v1814_v33 = vshrl.u32 %v1790_v26, 16  ;;  %v1207_v44 = vpack.c.bf16 %v1203_v35, %v1203_v35  ;;  %v1666_v27 = vrot.slane %v1659_v14, %v3604_v4 }
 0x5b8   : > { %v1806_v32 = vshrl.u32 %v1791_v36, 16  ;;  %v3129_v45 = vpop.eup %3128  ;;  %v1757_v46 = vcombine.high %v1749_v38, %v3321_v29  ;;  %v1795_v20 = vpack.i.b16 %v1783_v24, %v1749_v38  ;;  %v1797_v48 = vshrl.u32 %v1749_v38, 16 }
 0x5b9   : > { %v1758_v47 = vcombine.high %v1756_v41, %v3321_v29  ;;  %v1204_v49 = vmul.f32 %v3129_v45, %v3714_v40  ;;  %v1822_v50 = vshrl.u32 %v1792_v17, 16  ;;  %v1811_v51 = vpack.i.b16 %v1790_v26, %v1756_v41  ;;  %2937 = vmatmul.mubr.msk.bf16.vlgmr.msra.gmra.mrb[12].mxu1 %vm976_vm6, %v1207_v44 }
 0x5ba   : > { %v1813_v52 = vshrl.u32 %v1756_v41, 16  ;;  %v1799_v58 = vpack.i.b16 %v1798_v43, %v1797_v48  ;;  %v1803_v61 = vpack.i.b16 %v1791_v36, %v1757_v46  ;;  %v1805_v60 = vshrl.u32 %v1757_v46, 16  ;;  %2948 = vmatprep.mubr.msk.bf16.mxu1 %vm3314_vm1, %v3313_v15 }
 0x5bb   : > { %v1819_v62 = vpack.i.b16 %v1792_v17, %v1758_v47  ;;  %v1821_v0 = vshrl.u32 %v1758_v47, 16  ;;  %v1825_v2 = vcombine.low %v1795_v20, %v1811_v51  ;;  %v1208_v5 = vpack.c.bf16 %v1204_v49, %v1204_v49 }
 0x5bc   : > { %v1815_v63 = vpack.i.b16 %v1814_v33, %v1813_v52  ;;  %v1637_v40 = vpack.i.b16 %v3770_v42, %v3764_v9  ;;  %v1807_v6 = vpack.i.b16 %v1806_v32, %v1805_v60  ;;  %v1691_v9 = vrot.slane %v1684_v8, %v3604_v4 }
 0x5bd   : > { %v1833_v7 = vcombine.low %v1803_v61, %v1819_v62  ;;  %v1823_v10 = vpack.i.b16 %v1822_v50, %v1821_v0  ;;  %2943 = vmatmul.mubr.msk.bf16.vlgmr.msra.gmra.mrb[16].mxu0 %vm976_vm6, %v1208_v5  ;;  %v1832_v18 = vrot.slane %v1825_v2, %v3604_v4  ;;  %v1683_v23 = vrot.slane %v1676_v13, %v3604_v4 }
 0x5be   : > { %v1850_v11 = vcombine.low %v1799_v58, %v1815_v63  ;;  %2954 = vmatprep.mubr.msk.bf16.mxu0 %vm3314_vm1, %v3313_v15  ;;  %v1651_v39 = vcombine.low %v1621_v3, %v1637_v40 }
 0x5bf   : > { %v1840_v22 = vrot.slane %v1833_v7, %v3604_v4  ;;  %v1858_v25 = vcombine.low %v1807_v6, %v1823_v10  ;;  %v1692_v34 = vcombine.low %v1683_v23, %v1691_v9 }
 0x5c0   : > { %v1857_v42 = vrot.slane %v1850_v11, %v3604_v4  ;;  %v1658_v19 = vrot.slane %v1651_v39, %v3604_v4 }
 0x5c1   : > { %v1841_v24 = vcombine.low %v1832_v18, %v1840_v22  ;;  %v1865_v26 = vrot.slane %v1858_v25, %v3604_v4  ;;  %v1699_v43 = vrot.slane %v1692_v34, %v3612_v12 }
 0x5c2   : > { %v1667_v35 = vcombine.low %v1658_v19, %v1666_v27 }
 0x5c3   : > { %v1848_v30 = vrot.slane %v1841_v24, %v3612_v12  ;;  %v1866_v31 = vcombine.low %v1857_v42, %v1865_v26  ;;  %v1705_v47 = vshrl.u32 %v1699_v43, 16  ;;  %v1700_v58 = vcombine.high %v1699_v43, %v3321_v29 }
 0x5c4   : > { %v1674_v44 = vrot.slane %v1667_v35, %v3612_v12 }
 0x5c5   : > { %v1873_v28 = vrot.slane %v1866_v31, %v3612_v12  ;;  %v1878_v17 = vshrl.u32 %v1848_v30, 16  ;;  %v1849_v32 = vcombine.high %v1848_v30, %v3321_v29  ;;  %v1711_v62 = vshrl.u32 %v1700_v58, 16 }
 0x5c6   : > { %v1703_v48 = vpack.i.b16 %v1699_v43, %v1674_v44  ;;  %v1704_v49 = vshrl.u32 %v1674_v44, 16  ;;  %v1675_v60 = vcombine.high %v1674_v44, %v3321_v29 }
 0x5c7   : > { %v1877_v36 = vpack.i.b16 %v1873_v28, %v1848_v30  ;;  %v1879_v37 = vshrl.u32 %v1873_v28, 16  ;;  %v1874_v54 = vcombine.high %v1873_v28, %v3321_v29  ;;  %v1884_v20 = vshrl.u32 %v1849_v32, 16 }
 0x5c8   : > { %v1706_v52 = vpack.i.b16 %v1705_v47, %v1704_v49  ;;  %v1709_v63 = vpack.i.b16 %v1700_v58, %v1675_v60  ;;  %v1710_v0 = vshrl.u32 %v1675_v60, 16 }
 0x5c9   : > { %v2061_v38 = vsel %vm976_vm6, %v1877_v36, 0  ;;  %v1880_v41 = vpack.i.b16 %v1879_v37, %v1878_v17  ;;  %v1885_v45 = vshrl.u32 %v1874_v54, 16  ;;  %v1883_v46 = vpack.i.b16 %v1874_v54, %v1849_v32 }
 0x5ca   : > { %2947 = vmatpush3.bf16.xpose.msra.mxu1 %v2061_v38  ;;  %v1712_v2 = vpack.i.b16 %v1711_v62, %v1710_v0 }
 0x5cb   : > { %v2107_v33 = vsel %vm976_vm6, %v1880_v41, 0  ;;  %2958 = vmatprep.subr.bf16.mxu1 %v3313_v15  ;;  %v1886_v50 = vpack.i.b16 %v1885_v45, %v1884_v20  ;;  %v2153_v51 = vsel %vm976_vm6, %v1883_v46, 0 }
 0x5cc   : > { %2953 = vmatpush3.bf16.xpose.msra.mxu0 %v2107_v33 }
 0x5cd   : > { %2964 = vmatprep.subr.bf16.mxu0 %v3313_v15  ;;  %v2199_v61 = vsel %vm976_vm6, %v1886_v50, 0 }
 0x5d1   : > { %2949 = vmatmul.mubr.msk.bf16.vlgmr.msra.gmra.mrb[16].mxu1 %vm976_vm6, %v1703_v48 }
 0x5d2   : > { %2959 = vmatpush3.bf16.xpose.msra.mxu1 %v2153_v51  ;;  %2960 = vmatprep.mubr.msk.bf16.mxu1 %vm3314_vm1, %v3313_v15 }
 0x5d3   : > { %2955 = vmatmul.mubr.msk.bf16.vlgmr.msra.gmra.mrb[20].mxu0 %vm976_vm6, %v1706_v52  ;;  %2970 = vmatprep.subr.bf16.mxu1 %v3313_v15 }
 0x5d4   : > { %2965 = vmatpush3.bf16.xpose.msra.mxu0 %v2199_v61  ;;  %2966 = vmatprep.mubr.msk.bf16.mxu0 %vm3314_vm1, %v3313_v15 }
 0x5d5   : > { %2976 = vmatprep.subr.bf16.mxu0 %v3313_v15 }
 0x5d9   : > { %2961 = vmatmul.mubr.msk.bf16.vlgmr.msra.gmra.mrb[20].mxu1 %vm976_vm6, %v1709_v63 }
 0x5da   : > { %2972 = vmatprep.mubr.msk.bf16.mxu1 %vm3314_vm1, %v3313_v15 }
 0x5db   : > { %2967 = vmatmul.mubr.msk.bf16.vlgmr.msra.gmra.mrb[24].mxu0 %vm976_vm6, %v1712_v2 }
 0x5dc   : > { %2978 = vmatprep.mubr.msk.bf16.mxu0 %vm3314_vm1, %v3313_v15 }
 0x684   : > { %v1250_v5 = vpop.f32.mrb[8].mxu1 }
 0x685   : > { %v2926_v3 = vpop.f32.mrb[9].mxu1 }
 0x686   : > { %v1253_v40 = vpop.f32.mrb[10].mxu1  ;;  %v1296_v6 = vpop.f32.mrb[12].mxu0 }
 0x687   : > { %v2927_v7 = vpop.f32.mrb[11].mxu1  ;;  %v2932_v8 = vpop.f32.mrb[13].mxu0 }
 0x688   : > { %v1299_v10 = vpop.f32.mrb[14].mxu0 }
 0x689   : > { %v2933_v11 = vpop.f32.mrb[15].mxu0 }
 0x68c   : > { %v1342_v14 = vpop.f32.mrb[12].mxu1 }
 0x68d   : > { %v1394_v18 = vcombine.low %v1250_v5, %v1342_v14  ;;  %v1395_v22 = vcombine.high %v1250_v5, %v1342_v14  ;;  %v2938_v13 = vpop.f32.mrb[13].mxu1 }
 0x68e   : > { %v1345_v25 = vpop.f32.mrb[14].mxu1 }
 0x68f   : > { %v2939_v39 = vpop.f32.mrb[15].mxu1  ;;  %v1402_v23 = vrot.slane %v1394_v18, %v3604_v4  ;;  %v1409_v30 = vrot.slane %v1395_v22, %v3604_v4 }
 0x690   : > { %v1388_v24 = vpop.f32.mrb[16].mxu0 }
 0x691   : > { %v1410_v9 = vcombine.low %v1296_v6, %v1388_v24  ;;  %v1411_v42 = vcombine.high %v1296_v6, %v1388_v24  ;;  %v2944_v26 = vpop.f32.mrb[17].mxu0 }
 0x692   : > { %v1391_v27 = vpop.f32.mrb[18].mxu0 }
 0x693   : > { %v1418_v31 = vrot.slane %v1410_v9, %v3604_v4  ;;  %v1425_v19 = vrot.slane %v1411_v42, %v3604_v4  ;;  %v2945_v28 = vpop.f32.mrb[19].mxu0 }
 0x695   : > { %v1426_v34 = vcombine.low %v1402_v23, %v1418_v31  ;;  %v1427_v35 = vcombine.high %v1402_v23, %v1418_v31  ;;  %v1442_v36 = vcombine.low %v1409_v30, %v1425_v19  ;;  %v1443_v17 = vcombine.high %v1409_v30, %v1425_v19 }
 0x697   : > { %v1434_v37 = vrot.slane %v1426_v34, %v3612_v12  ;;  %v1441_v54 = vrot.slane %v1427_v35, %v3612_v12  ;;  %v1450_v38 = vrot.slane %v1442_v36, %v3612_v12  ;;  %v1457_v41 = vrot.slane %v1443_v17, %v3612_v12 }
 0x699   : > { %v1462_v43 = vcombine.low %v1434_v37, %v1441_v54  ;;  %v2829_v32 = vcombine.high %v1434_v37, %v1441_v54  ;;  %v1478_v33 = vcombine.low %v1450_v38, %v1457_v41  ;;  %v2830_v44 = vcombine.high %v1450_v38, %v1457_v41 }
 0x69b   : > { %v1469_v45 = vrot.slane %v1462_v43, %v3604_v4  ;;  %v1477_v46 = vrot.slane %v2829_v32, %v3604_v4  ;;  %v1485_v47 = vrot.slane %v1478_v33, %v3604_v4  ;;  %v1493_v20 = vrot.slane %v2830_v44, %v3604_v4 }
 0x69d   : > { %v1495_v48 = vcombine.high %v1469_v45, %v1477_v46  ;;  %v1511_v49 = vcombine.high %v1485_v47, %v1493_v20  ;;  %v1494_v50 = vcombine.low %v1469_v45, %v1477_v46  ;;  %v1510_v51 = vcombine.low %v1485_v47, %v1493_v20 }
 0x69f   : > { %v3886_v52 = vrot.slane %v1495_v48, %v3612_v12  ;;  %v3889_v58 = vrot.slane %v1511_v49, %v3612_v12  ;;  %v3892_v61 = vrot.slane %v1494_v50, %v3612_v12  ;;  %v3895_v60 = vrot.slane %v1510_v51, %v3612_v12 }
 0x6a1   : > { %v1528_v62 = vcombine.low %v3886_v52, %v3889_v58  ;;  %v1526_v63 = vcombine.low %v3892_v61, %v3895_v60  ;;  %v1527_v0 = vcombine.high %v3892_v61, %v3895_v60  ;;  %v1529_v2 = vcombine.high %v3886_v52, %v3889_v58  ;;  %v2841_v61 = vld [vmem:[%s4083_s6] ss:$0 sm:$0xff] }
 0x6a4   : > { %v2097_v5 = vpop.f32.mrb[16].mxu1 }
 0x6a5   : > { %v2950_v3 = vpop.f32.mrb[17].mxu1  ;;  %v2241_v40 = vsel %vm976_vm6, %v2097_v5, -inf }
 0x6a6   : > { %2242 = vmax.xlane.f32.xlu0 %v2241_v40  ;;  %v2100_v6 = vpop.f32.mrb[18].mxu1  ;;  %v2143_v7 = vpop.f32.mrb[20].mxu0 }
 0x6a7   : > { %v2951_v8 = vpop.f32.mrb[19].mxu1  ;;  %v2956_v10 = vpop.f32.mrb[21].mxu0  ;;  %v2244_v11 = vsel %vm976_vm6, %v2143_v7, -inf }
 0x6a8   : > { %2245 = vmax.xlane.f32.xlu1 %v2244_v11  ;;  %v2146_v14 = vpop.f32.mrb[22].mxu0 }
 0x6a9   : > { %v2957_v18 = vpop.f32.mrb[23].mxu0 }
 0x6ac   : > { %v2189_v22 = vpop.f32.mrb[20].mxu1 }
 0x6ad   : > { %v2962_v13 = vpop.f32.mrb[21].mxu1  ;;  %v2247_v25 = vsel %vm976_vm6, %v2189_v22, -inf }
 0x6ae   : > { %2248 = vmax.xlane.f32.xlu0 %v2247_v25  ;;  %v2192_v39 = vpop.f32.mrb[22].mxu1  ;;  %v2235_v24 = vpop.f32.mrb[24].mxu0 }
 0x6af   : > { %v2963_v9 = vpop.f32.mrb[23].mxu1  ;;  %v2968_v42 = vpop.f32.mrb[25].mxu0  ;;  %v2250_v23 = vsel %vm976_vm6, %v2235_v24, -inf }
 0x6b0   : > { %v2238_v26 = vpop.f32.mrb[26].mxu0 }
 0x6b1   : > { %v2969_v27 = vpop.f32.mrb[27].mxu0 }
 0x6b2   : > { %2251 = vmax.xlane.f32.xlu0 %v2250_v23 }
 0x6b9   : > { %1889 = vrot.lane.b32.xlu1 %v1714_v59, %s3322_s12 }
 0x6bd   : > { %1891 = vrot.lane.b32.xlu1 %v1715_v1, %s3322_s12 }
 0x733   : > { %v2243_v30 = vpop.xlane.xlu0 %2242 }
 0x734   : > { %v2253_v31 = vsub.f32 %v2097_v5, %v2243_v30 }
 0x735   : > { %v2246_v19 = vpop.xlane.xlu1 %2245 }
 0x736   : > { %v2257_v28 = vmul.f32 1.442695, %v2253_v31  ;;  %v2254_v34 = vsub.f32 %v2143_v7, %v2246_v19 }
 0x738   : > { %3130 = vpow2.f32 %v2257_v28  ;;  %v2259_v35 = vmul.f32 1.442695, %v2254_v34 }
 0x73a   : > { %3132 = vpow2.f32 %v2259_v35 }
 0x73b   : > { %v2249_v56 = vpop.xlane.xlu0 %2248 }
 0x73c   : > { %v2255_v1 = vsub.f32 %v2189_v22, %v2249_v56 }
 0x73e   : > { %v2261_v38 = vmul.f32 1.442695, %v2255_v1 }
 0x73f   : > { %v2252_v59 = vpop.xlane.xlu0 %2251 }
 0x740   : > { %v2256_v54 = vsub.f32 %v2235_v24, %v2252_v59  ;;  %3134 = vpow2.f32 %v2261_v38 }
 0x742   : > { %v3915_v36 = vpop.eup %3130  ;;  %v2263_v41 = vmul.f32 1.442695, %v2256_v54 }
 0x743   : > { %v2265_v17 = vsel %vm976_vm6, %v3915_v36, 0.0 }
 0x744   : > { %v3919_v37 = vpop.eup %3132  ;;  %2266 = vadd.xlane.f32.xlu0 %v2265_v17  ;;  %3136 = vpow2.f32 %v2263_v41 }
 0x745   : > { %v2268_v55 = vsel %vm976_vm6, %v3919_v37, 0.0 }
 0x746   : > { %2269 = vadd.xlane.f32.xlu1 %v2268_v55 }
 0x74a   : > { %v3929_v43 = vpop.eup %3134 }
 0x74b   : > { %v2271_v57 = vsel %vm976_vm6, %v3929_v43, 0.0 }
 0x74e   : > { %v3931_v32 = vpop.eup %3136 }
 0x74f   : > { %v2274_v53 = vsel %vm976_vm6, %v3931_v32, 0.0 }
 0x757   : > { %1893 = vrot.lane.b32.xlu1 %v1716_v16, %s3322_s12  ;;  %v1890_v16 = vpop.permute.xlu1 %1889 }
 0x758   : > { %v1936_v48 = vrot.slane %v1890_v16, %v3604_v4 }
 0x75a   : > { %1887 = vrot.lane.b32.xlu0 %v1713_v21, %s3322_s12  ;;  %s323_s12 = scalar_lea.vmem [#allocation8], %s2811_s20 }
 0x75b   : > { %v1892_v21 = vpop.permute.xlu1 %1891  ;;  %s2710_s14 = sshll.u32 %s323_s12, 4  ;;  %s4031_s14 = int_to_ptr.vmem [resolvable:$true] %s2710_s14 }
 0x75c   : > { %v1910_v46 = vrot.slane %v1892_v21, %v3604_v4  ;;  %s3234_s20 = scalar_lea.vmem %s4031_s14, 256 }
 0x75d   : > { %p3235_p11 = scmp.ne.s32.totalorder %s4031_s14, %s3234_s20 }
 0x75f   : > { %p3236_p1 = pnand %p3235_p11, %p4098_p0 }
 0x761   : > { %p3237_p3 = pneg %p3236_p1 }
 0x779   : > { %2272 = vadd.xlane.f32.xlu0 %v2271_v57 }
 0x77b   : > { %2275 = vadd.xlane.f32.xlu1 %v2274_v53 }
 0x7d1   : > { %v2267_v33 = vpop.xlane.xlu0 %2266 }
 0x7d2   : > { %3138 = vrcp.f32 %v2267_v33 }
 0x7d3   : > { %v2270_v44 = vpop.xlane.xlu1 %2269 }
 0x7d4   : > { %3140 = vrcp.f32 %v2270_v44 }
 0x7d5   : > { %v1888_v45 = vpop.permute.xlu0 %1887 }
 0x7d6   : > { %v1902_v47 = vrot.slane %v1888_v45, %v3604_v4 }
 0x7d7   : > { %v1894_v20 = vpop.permute.xlu1 %1893 }
 0x7d8   : > { %v1911_v49 = vcombine.low %v1902_v47, %v1910_v46  ;;  %v1912_v50 = vcombine.high %v1902_v47, %v1910_v46  ;;  %v1944_v51 = vrot.slane %v1894_v20, %v3604_v4 }
 0x7da   : > { %v1919_v5 = vrot.slane %v1911_v49, %v3612_v12  ;;  %v1926_v3 = vrot.slane %v1912_v50, %v3612_v12  ;;  %v1945_v40 = vcombine.low %v1936_v48, %v1944_v51  ;;  %v1946_v6 = vcombine.high %v1936_v48, %v1944_v51 }
 0x7dc   : > { %v1927_v7 = vcombine.high %v1919_v5, %v3321_v29  ;;  %v1928_v8 = vcombine.high %v1926_v3, %v3321_v29  ;;  %v1953_v10 = vrot.slane %v1945_v40, %v3612_v12  ;;  %v1960_v11 = vrot.slane %v1946_v6, %v3612_v12  ;;  %v3139_v38 = vpop.eup %3138 }
 0x7dd   : > { %v1967_v14 = vshrl.u32 %v1919_v5, 16  ;;  %v1983_v18 = vshrl.u32 %v1926_v3, 16  ;;  %v2281_v46 = vmul.f32 %v3139_v38, %v3915_v36 }
 0x7de   : > { %v1975_v22 = vshrl.u32 %v1927_v7, 16  ;;  %v1961_v13 = vcombine.high %v1953_v10, %v3321_v29  ;;  %v1962_v25 = vcombine.high %v1960_v11, %v3321_v29  ;;  %v1965_v39 = vpack.i.b16 %v1953_v10, %v1919_v5  ;;  %v3141_v16 = vpop.eup %3140 }
 0x7df   : > { %v1991_v24 = vshrl.u32 %v1928_v8, 16  ;;  %v1968_v9 = vshrl.u32 %v1953_v10, 16  ;;  %v1981_v42 = vpack.i.b16 %v1960_v11, %v1926_v3  ;;  %v1984_v26 = vshrl.u32 %v1960_v11, 16 }
 0x7e0   : > { %v1973_v27 = vpack.i.b16 %v1961_v13, %v1927_v7  ;;  %v1976_v23 = vshrl.u32 %v1961_v13, 16  ;;  %v1989_v30 = vpack.i.b16 %v1962_v25, %v1928_v8  ;;  %v1992_v31 = vshrl.u32 %v1962_v25, 16 }
 0x7e1   : > { %v1969_v19 = vpack.i.b16 %v1968_v9, %v1967_v14  ;;  %v1985_v28 = vpack.i.b16 %v1984_v26, %v1983_v18  ;;  %v1995_v34 = vcombine.low %v1965_v39, %v1981_v42  ;;  %v2282_v50 = vmul.f32 %v3141_v16, %v3919_v37 }
 0x7e2   : > { %v1977_v35 = vpack.i.b16 %v1976_v23, %v1975_v22  ;;  %v1993_v17 = vpack.i.b16 %v1992_v31, %v1991_v24  ;;  %v2003_v55 = vcombine.low %v1973_v27, %v1989_v30  ;;  %v2285_v8 = vpack.c.bf16 %v2281_v46, %v2281_v46 }
 0x7e3   : > { %v2020_v56 = vcombine.low %v1969_v19, %v1985_v28  ;;  %v2002_v59 = vrot.slane %v1995_v34, %v3604_v4  ;;  %v2286_v10 = vpack.c.bf16 %v2282_v50, %v2282_v50 }
 0x7e4   : > { %v2028_v1 = vcombine.low %v1977_v35, %v1993_v17  ;;  %v2010_v54 = vrot.slane %v2003_v55, %v3604_v4 }
 0x7e5   : > { %v2027_v57 = vrot.slane %v2020_v56, %v3604_v4 }
 0x7e6   : > { %v2011_v41 = vcombine.low %v2002_v59, %v2010_v54  ;;  %v2035_v53 = vrot.slane %v2028_v1, %v3604_v4 }
 0x7e8   : > { %v2018_v21 = vrot.slane %v2011_v41, %v3612_v12  ;;  %v2036_v33 = vcombine.low %v2027_v57, %v2035_v53 }
 0x7ea   : > { %v2043_v44 = vrot.slane %v2036_v33, %v3612_v12  ;;  %v2019_v45 = vcombine.high %v2018_v21, %v3321_v29  ;;  %v2048_v20 = vshrl.u32 %v2018_v21, 16 }
 0x7ec   : > { %v2047_v47 = vpack.i.b16 %v2043_v44, %v2018_v21  ;;  %v2049_v48 = vshrl.u32 %v2043_v44, 16  ;;  %v2044_v49 = vcombine.high %v2043_v44, %v3321_v29  ;;  %v2054_v51 = vshrl.u32 %v2019_v45, 16 }
 0x7ee   : > { %v2293_v5 = vsel %vm1212_vm7, %v2047_v47, 0  ;;  %v2050_v3 = vpack.i.b16 %v2049_v48, %v2048_v20  ;;  %v2053_v40 = vpack.i.b16 %v2044_v49, %v2019_v45  ;;  %v2055_v6 = vshrl.u32 %v2044_v49, 16 }
 0x7ef   : > { %2971 = vmatpush3.bf16.msra.mxu1 %v2293_v5 }
 0x7f0   : > { %v2339_v7 = vsel %vm1212_vm7, %v2050_v3, 0  ;;  %2982 = vmatprep.subr.bf16.mxu1 %v3313_v15  ;;  %v2056_v36 = vpack.i.b16 %v2055_v6, %v2054_v51  ;;  %v2385_v29 = vsel %vm1212_vm7, %v2053_v40, 0  ;;  %v3104_v3 = vld [vmem:[%s4082_s5] sm:$0xff]  }
 0x7f1   : > { %2977 = vmatpush3.bf16.msra.mxu0 %v2339_v7 }
 0x7f2   : > { %2973 = vmatmul.mubr.msk.bf16.vlgmr.msra.gmra.mrb[24].mxu1 %vm976_vm6, %v2285_v8  ;;  %2988 = vmatprep.subr.bf16.mxu0 %v3313_v15  ;;  %v2431_v37 = vsel %vm1212_vm7, %v2056_v36, 0 }
 0x7f3   : > { %2983 = vmatpush3.bf16.msra.mxu1 %v2385_v29  ;;  %2984 = vmatprep.mubr.msk.bf16.mxu1 %vm3314_vm1, %v3313_v15 }
 0x7f4   : > { %2979 = vmatmul.mubr.msk.bf16.vlgmr.msra.gmra.mrb[28].mxu0 %vm976_vm6, %v2286_v10  ;;  %2994 = vmatprep.subr.bf16.mxu1 %v3313_v15 }
 0x7f5   : > { %2989 = vmatpush3.bf16.msra.mxu0 %v2431_v37  ;;  %2990 = vmatprep.mubr.msk.bf16.mxu0 %vm3314_vm1, %v3313_v15 }
 0x806   : > { %v2273_v11 = vpop.xlane.xlu0 %2272 }
 0x807   : > { %3142 = vrcp.f32 %v2273_v11  ;;  %v3105_v11 = vld [vmem:[%s4082_s5 + $0x8] sm:$0xff]  }
 0x808   : > { %v2276_v14 = vpop.xlane.xlu1 %2275 }
 0x809   : > { %3144 = vrcp.f32 %v2276_v14 }
 0x811   : > { %v3143_v18 = vpop.eup %3142 }
 0x812   : > { %v2283_v22 = vmul.f32 %v3143_v18, %v3929_v43 }
 0x813   : > { %v3145_v13 = vpop.eup %3144 }
 0x814   : > { %v2284_v25 = vmul.f32 %v3145_v13, %v3931_v32  ;;  %v2287_v39 = vpack.c.bf16 %v2283_v22, %v2283_v22 }
 0x816   : > { %2985 = vmatmul.mubr.msk.bf16.vlgmr.msra.gmra.mrb[28].mxu1 %vm976_vm6, %v2287_v39  ;;  %v2288_v24 = vpack.c.bf16 %v2284_v25, %v2284_v25 }
 0x817   : > { %2998 = vmatprep.mubr.msk.bf16.mxu1 %vm3314_vm1, %v3313_v15  ;;  %2995 = vmatpush3.bf16.msra.mxu1 %v3104_v3 }
 0x818   : > { %2991 = vmatmul.mubr.msk.bf16.vlgmr.msra.gmra.mrb[32].mxu0 %vm976_vm6, %v2288_v24  ;;  %2996 = vmatprep.subr.bf16.mxu1 %v3313_v15 }
 0x81b   : > { %2997 = vmatpush3.bf16.msra.mxu1 %v3105_v11 }
 0x8c5   : > { %v2329_v9 = vpop.f32.mrb[24].mxu1 }
 0x8c6   : > { %v2974_v42 = vpop.f32.mrb[25].mxu1 }
 0x8c7   : > { %v2332_v26 = vpop.f32.mrb[26].mxu1  ;;  %v2375_v27 = vpop.f32.mrb[28].mxu0 }
 0x8c8   : > { %v2975_v23 = vpop.f32.mrb[27].mxu1  ;;  %v2980_v30 = vpop.f32.mrb[29].mxu0 }
 0x8c9   : > { %v2378_v31 = vpop.f32.mrb[30].mxu0 }
 0x8ca   : > { %v2981_v43 = vpop.f32.mrb[31].mxu0 }
 0x8e9   : > { %v2421_v19 = vpop.f32.mrb[28].mxu1 }
 0x8ea   : > { %v2473_v28 = vcombine.low %v2329_v9, %v2421_v19  ;;  %v2474_v32 = vcombine.high %v2329_v9, %v2421_v19  ;;  %v2986_v34 = vpop.f32.mrb[29].mxu1 }
 0x8eb   : > { %v2424_v35 = vpop.f32.mrb[30].mxu1  ;;  %v2467_v17 = vpop.f32.mrb[32].mxu0 }
 0x8ec   : > { %v2489_v55 = vcombine.low %v2375_v27, %v2467_v17  ;;  %v2490_v56 = vcombine.high %v2375_v27, %v2467_v17  ;;  %v2987_v59 = vpop.f32.mrb[31].mxu1  ;;  %v2992_v1 = vpop.f32.mrb[33].mxu0  ;;  %v2481_v38 = vrot.slane %v2473_v28, %v3604_v4  ;;  %v2488_v41 = vrot.slane %v2474_v32, %v3604_v4 }
 0x8ed   : > { %v2470_v54 = vpop.f32.mrb[34].mxu0 }
 0x8ee   : > { %v2497_v57 = vrot.slane %v2489_v55, %v3604_v4  ;;  %v2504_v53 = vrot.slane %v2490_v56, %v3604_v4  ;;  %v2993_v16 = vpop.f32.mrb[35].mxu0  ;;  %v3146_v55 = vld [vmem:[%s3547_s11] sm:$0xff]  ;;  %v3147_v54 = vld [vmem:[%s3547_s11 + $0x8] sm:$0xff] }
 0x8f0   : > { %v2505_v21 = vcombine.low %v2481_v38, %v2497_v57  ;;  %v2506_v33 = vcombine.high %v2481_v38, %v2497_v57  ;;  %v2521_v44 = vcombine.low %v2488_v41, %v2504_v53  ;;  %v2522_v45 = vcombine.high %v2488_v41, %v2504_v53 }
 0x8f2   : > { %v2513_v46 = vrot.slane %v2505_v21, %v3612_v12  ;;  %v2520_v47 = vrot.slane %v2506_v33, %v3612_v12  ;;  %v2529_v20 = vrot.slane %v2521_v44, %v3612_v12  ;;  %v2536_v48 = vrot.slane %v2522_v45, %v3612_v12 }
 0x8f4   : > { %v2541_v49 = vcombine.low %v2513_v46, %v2520_v47  ;;  %v2839_v50 = vcombine.high %v2513_v46, %v2520_v47  ;;  %v2557_v51 = vcombine.low %v2529_v20, %v2536_v48  ;;  %v2840_v5 = vcombine.high %v2529_v20, %v2536_v48 }
 0x8f6   : > { %v2548_v40 = vrot.slane %v2541_v49, %v3604_v4  ;;  %v2556_v6 = vrot.slane %v2839_v50, %v3604_v4  ;;  %v2564_v7 = vrot.slane %v2557_v51, %v3604_v4  ;;  %v2572_v8 = vrot.slane %v2840_v5, %v3604_v4 }
 0x8f8   : > { %v2574_v36 = vcombine.high %v2548_v40, %v2556_v6  ;;  %v2590_v29 = vcombine.high %v2564_v7, %v2572_v8  ;;  %v2573_v10 = vcombine.low %v2548_v40, %v2556_v6  ;;  %v2589_v37 = vcombine.low %v2564_v7, %v2572_v8 }
 0x8fa   : > { %v2588_v14 = vrot.slane %v2574_v36, %v3612_v12  ;;  %v2604_v18 = vrot.slane %v2590_v29, %v3612_v12  ;;  %v2581_v22 = vrot.slane %v2573_v10, %v3612_v12  ;;  %v2597_v13 = vrot.slane %v2589_v37, %v3612_v12 }
 0x8fc   : > { %v2607_v4 = vcombine.low %v2588_v14, %v2604_v18  ;;  %v2606_v25 = vcombine.high %v2581_v22, %v2597_v13  ;;  %v2605_v39 = vcombine.low %v2581_v22, %v2597_v13  ;;  %v2608_v24 = vcombine.high %v2588_v14, %v2604_v18 }
 0x8fe   : > { %v3092_v15 = vpack.i.bf16 %v2607_v4, %v1528_v62  ;;  %v3087_v9 = vpack.i.bf16 %v2606_v25, %v1527_v0  ;;  %v3097_v42 = vpack.i.bf16 %v2608_v24, %v1529_v2 }
 0x900   : > { %3093 = vrot.lane.b32.xlu1 %v3092_v15, %s3323_s21  ;;  %3088 = vrot.lane.b32.xlu0 %v3087_v9, %s3324_s22  ;;  %s3326_s21 = smov [#allocation8]  }
 0x904   : > { %3098 = vrot.lane.b32.xlu0 %v3097_v42, %s3325_s23  ;;  %s3238_s23 = sshll.u32 %s3326_s21, 4  ;;  %s3239_s23 = int_to_ptr.vmem [resolvable:$false] %s3238_s23 }
 0x905   : > { %s3240_s29 = scalar_lea.vmem %s3239_s23, 512  ;;  %p3241_p7 = scmp.lt.s32.totalorder %s4031_s14, %s3239_s23 }
 0x906   : > { %p3242_p9 = scmp.lt.s32.totalorder %s3240_s29, %s3234_s20 }
 0x908   : > { %p3243_p12 = por %p3242_p9, %p3241_p7 }
 0x90a   : > { %p3244_p2 = pnand %p3243_p12, %p3237_p3 }
 0x972   : > { %v3094_v12 = vpop.permute.xlu1 %3093  ;;  %v3089_v26 = vpop.permute.xlu0 %3088 }
 0x973   : > { %v3091_v27 = vunpack.i.h.bf16 %v3089_v26  ;;  %v3090_v23 = vunpack.i.l.bf16 %v3089_v26  ;;  %v3096_v62 = vunpack.i.h.bf16 %v3094_v12  ;;  %v3095_v30 = vunpack.i.l.bf16 %v3094_v12 }
 0x975   : > { %v1542_v0 = vsel %vm976_vm6, %v1526_v63, %v3090_v23  ;;  %v2621_v52 = vsel %vm976_vm6, %v2605_v39, %v3091_v27 }
 0x976   : > { %v3099_v58 = vpop.permute.xlu0 %3098  ;;  %v1544_v43 = vsel %vm1543_vm8, %v1542_v0, %v3095_v30  ;;  %v2622_v19 = vsel %vm1543_vm8, %v2621_v52, %v3096_v62 }
 0x977   : > { %v3101_v2 = vunpack.i.h.bf16 %v3099_v58  ;;  %v3100_v31 = vunpack.i.l.bf16 %v3099_v58 }
 0x979   : > { %v1546_v28 = vsel %vm1545_vm9, %v1544_v43, %v3100_v31  ;;  %v2623_v32 = vsel %vm1545_vm9, %v2622_v19, %v3101_v2 }
 0x97a   : > { %v2624_v34 = vpack.c.bf16 %v2623_v32, %v1546_v28 }
 0x97c   : > { %2999 = vmatmul.mubr.msk.bf16.vlgmr.msra.gmra.mrb[32].mxu1 %vm329_vm0, %v2624_v34 }
 0xa4f   : > { %v2685_v60 = vpop.f32.mrb[32].mxu1 }
 0xa50   : > { %v2686_v63 = vadd.f32 %v2841_v61, %v2685_v60  ;;  %v3000_v35 = vpop.f32.mrb[33].mxu1 }
 0xa51   : > { %v2688_v17 = vpop.f32.mrb[34].mxu1 }
 0xa52   : > { %v2692_v56 = vadd.f32 %v3146_v55, %v2686_v63  ;;  %v2689_v59 = vadd.f32 %v2841_v61, %v2688_v17  ;;  %v3001_v1 = vpop.f32.mrb[35].mxu1 }
 0xa54   : > { %2694 = vst.msk [vmem:[%s323_s12] sm:$0xff] %vm329_vm0, %v2692_v56  ;;  %v2693_v38 = vadd.f32 %v3147_v54, %v2689_v59 }
 0xa56   : > { %2695 = vst.msk [vmem:[%s323_s12 + $0x8] sm:$0xff] %vm329_vm0, %v2693_v38 }
 0xa57   : > { %3247 = shalt.err (!%p3244_p2)
}
 0xa58   : > { %s3248_s11 = scalar_lea.hbm %s4027_s9, 256  ;;  %s3252_s12 = scalar_lea.hbm %s4084_s7, 512 }
 0xa59   : > { %p3249_p13 = scmp.ne.s32.totalorder %s4027_s9, %s3248_s11  ;;  %p3253_p4 = scmp.lt.u32.totalorder %s4027_s9, %s4084_s7 }
 0xa5a   : > { %p3254_p5 = scmp.lt.u32.totalorder %s3252_s12, %s3248_s11  ;;  %p3256_p11 = scmp.lt.u32.totalorder %s3248_s11, %s4027_s9 }
 0xa5b   : > { %p3250_p6 = pnand %p3249_p13, %p4098_p0 }
 0xa5c   : > { %p3255_p8 = por %p3254_p5, %p3253_p4 }
 0xa5d   : > { %p3251_p10 = pneg %p3250_p6 }
 0xa5e   : > { %p3257_p1 = por %p3256_p11, %p3255_p8 }
 0xa60   : > { %p3258_p3 = pnand %p3257_p1, %p3251_p10 }
 0xa62   : > { %3261 = shalt.err (!%p3258_p3)
}
 0xa63   : > { %s3327_s20 = smov 128  }
 0xa64   : > { %3012 = dma.vmem_to_hbm [thread:$0]  (%p4098_p0), %s4031_s14, 256, %s4027_s9, %s2697_s28, %s3327_s20, %s3327_s20, %s3324_s22  }
 0xa65 PF: > { %s2725_s21 = sand.u32 1, %s3292_s24   ;;  %p4099_p7 = scmp.ne.s32.totalorder %s4089_s8, 0 }
 0xa66   : > { %p4100_p9 = scmp.ge.s32.totalorder %s3304_s27, 2  ;;  %s2726_s23 = scalar_lea.sflag [#allocation4], %s2725_s21 }
 0xa68   : > { %p3026_p12 = pnand %p4100_p9, %p4099_p7 }
 0xa6a   : > { %3287 = dma.done.wait (!%p3026_p12), %s2726_s23, 256  }
 0xa6b   : > { %3289 = vsyncadd (!%p3026_p12), %s2726_s23, 4294967040  ;;  %p21_p2 = scmp.ge.s32.totalorder %s3479_s10, 4   ;;  %s4101_s24 = smov %s3296_s25 }
 0xa6c   : > { %s4102_s25 = smov %s3300_s26  ;;  %s4103_s26 = smov %s3495_s16 }
 0xa6d   : > { %s4104_s27 = smov %s3479_s10  ;;  %23 = sbr.rel (!%p21_p2) target bundleno = 6 (0x6), region = 101 }
 0xa74   :  { %2731 = vsyncpa [#allocation3], 1 }
 0xa75   :  { %2733 = vsyncpa [#allocation3 + $0x1], 1 }
 0xa76   :  { %2734 = vsyncpa [#allocation6], 1 }
 0xa77   :  { %2735 = vsyncpa [#allocation4], 1 }
 0xa78   :  { %2737 = vsyncpa [#allocation4 + $0x1], 1 }

</bundles_post_ra>
